<compile_context>
chip_gen: v7x
topology: tpu7x:2x2x1
jax: 0.10.0
libtpu: 0.0.40
codegen_flags: <defaults>
</compile_context>

<pallas_src>
import functools
import math

import jax
import jax.numpy as jnp
from jax.experimental import pallas as pl
from jax.experimental.pallas import tpu as pltpu


# Explicit scoped-VMEM limit: safe headroom on v5e/v6e (128 MiB physical) and
# v7x (64 MiB physical).
_VMEM_LIMIT = 48 * 1024 * 1024


# ----------------------------- Pallas kernels -----------------------------

def _mha_math(x_resid, q_src, kv_src, kpad_row,
              wq_ref, bq_ref, wkv_ref, bkv_ref, wo_ref, bo_ref,
              g_ref, b_ref, num_heads, causal):
    """Shared fused body: QKV proj -> masked MHA -> Wo -> residual -> LayerNorm.

    x_resid : (Tq, D) f32 residual (== q_src here)
    q_src   : (Tq, D) f32 query-side activations
    kv_src  : (Tk, D) f32 key/value-side activations
    kpad_row: (1, Tk) f32 key-padding row (1.0 == masked)
    Returns (Tq, D) f32 LayerNorm'ed output.
    """
    f32 = jnp.float32
    bf16 = jnp.bfloat16

    Tq, D = q_src.shape
    Tk = kv_src.shape[0]
    dk = D // num_heads
    scale = f32(1.0 / math.sqrt(dk))
    neg = f32(-1e9)

    # Fused projections: bf16 operands on the MXU, f32 accumulation.
    q = jnp.dot(q_src.astype(bf16), wq_ref[...],
                preferred_element_type=f32) + bq_ref[...]            # (Tq, D)
    kvp = jnp.dot(kv_src.astype(bf16), wkv_ref[...],
                  preferred_element_type=f32) + bkv_ref[...]         # (Tk, 2D)
    k = kvp[:, :D]
    v = kvp[:, D:]

    # Mask built in-kernel (1.0 == masked in the padding row input).
    maskf = jnp.broadcast_to(kpad_row, (Tq, Tk)) > 0.5               # (Tq, Tk)
    if causal:
        rows = jax.lax.broadcasted_iota(jnp.int32, (Tq, Tk), 0)
        cols = jax.lax.broadcasted_iota(jnp.int32, (Tq, Tk), 1)
        maskf = jnp.logical_or(maskf, cols > rows)

    # TODO(synk): at production dk (>=128) replace the static unroll with a
    #             lax.fori_loop + pl.ds head slices to bound live ranges.
    ctx_parts = []
    for h in range(num_heads):                                       # static unroll
        sl = slice(h * dk, (h + 1) * dk)
        q_h = q[:, sl].astype(bf16)                                  # (Tq, dk)
        k_h = k[:, sl].astype(bf16)                                  # (Tk, dk)
        v_h = v[:, sl].astype(bf16)                                  # (Tk, dk)
        # q_h @ k_h^T without materializing a transpose.
        s = jax.lax.dot_general(q_h, k_h, (((1,), (1,)), ((), ())),
                                preferred_element_type=f32) * scale
        s = jnp.where(maskf, neg, s)                                 # masked_fill
        m = jnp.max(s, axis=-1, keepdims=True)
        p = jnp.exp(s - m)
        inv = pl.reciprocal(jnp.sum(p, axis=-1, keepdims=True), approx=True)
        p = p * inv
        ctx_parts.append(jnp.dot(p.astype(bf16), v_h,
                                 preferred_element_type=f32))        # (Tq, dk)

    # Single D-contraction output projection (fills the MXU depth).
    ctx = jnp.concatenate(ctx_parts, axis=-1)                        # (Tq, D)
    attn_out = jnp.dot(ctx.astype(bf16), wo_ref[...],
                       preferred_element_type=f32) + bo_ref[...]

    # Residual add + LayerNorm epilogue (f32).
    z = x_resid + attn_out
    mean = jnp.mean(z, axis=-1, keepdims=True)
    var = jnp.mean(jnp.square(z - mean), axis=-1, keepdims=True)
    zn = (z - mean) * jax.lax.rsqrt(var + f32(1e-5))
    return g_ref[...] * zn + b_ref[...]


def _self_attn_kernel(x_ref, kpad_ref,
                      wq_ref, bq_ref, wkv_ref, bkv_ref, wo_ref, bo_ref,
                      g_ref, b_ref, o_ref, *, num_heads):
    """Causal self-attention: Q/K/V all from the SAME x tile (one DMA)."""
    x = x_ref[0]                       # (T, D) f32
    out = _mha_math(x, x, x, kpad_ref[0],
                    wq_ref, bq_ref, wkv_ref, bkv_ref, wo_ref, bo_ref,
                    g_ref, b_ref, num_heads, causal=True)
    o_ref[0] = out


def _cross_attn_kernel(x_ref, enc_ref, kpad_ref,
                       wq_ref, bq_ref, wkv_ref, bkv_ref, wo_ref, bo_ref,
                       g_ref, b_ref, o_ref, *, num_heads):
    """Cross-attention: queries from the x q-tile, K/V from the encoder output."""
    x = x_ref[0]                       # (tq, D) f32
    enc = enc_ref[0]                   # (S, D)  f32
    out = _mha_math(x, x, enc, kpad_ref[0],
                    wq_ref, bq_ref, wkv_ref, bkv_ref, wo_ref, bo_ref,
                    g_ref, b_ref, num_heads, causal=False)
    o_ref[0] = out


def _ffn_kernel(x_ref, w1_ref, b1_ref, w2_ref, b2_ref, g_ref, bt_ref,
                o_ref, acc_ref):
    """Fused FFN with d_ff reduction tiling: relu(xW1+b1)W2 accumulated across the
    d_ff grid axis; residual + b2 + LayerNorm applied on the last step."""
    f32 = jnp.float32
    bf16 = jnp.bfloat16
    k = pl.program_id(1)

    @pl.when(k == 0)
    def _():
        acc_ref[...] = jnp.zeros_like(acc_ref)

    x = x_ref[...]                                                   # (tm, D) f32
    h = jnp.dot(x.astype(bf16), w1_ref[...],
                preferred_element_type=f32) + b1_ref[...]            # (tm, tff)
    h = jnp.maximum(h, 0.0)
    acc_ref[...] += jnp.dot(h.astype(bf16), w2_ref[...],
                            preferred_element_type=f32)              # (tm, D)

    @pl.when(k == pl.num_programs(1) - 1)
    def _():
        z = x + acc_ref[...] + b2_ref[...]
        mean = jnp.mean(z, axis=-1, keepdims=True)
        var = jnp.mean(jnp.square(z - mean), axis=-1, keepdims=True)
        o_ref[...] = g_ref[...] * ((z - mean) * jax.lax.rsqrt(var + f32(1e-5))) \
            + bt_ref[...]


# ----------------------------- kernel wrappers ------------------------------

def self_attn_block(p, x, key_pad, gamma, beta, num_heads):
    """out = LayerNorm(x + CausalMHA(q=x, k=x, v=x)); key_pad: (B,1,T) f32."""
    B, T, D = x.shape

    def const_spec(shape):
        # Weight / bias blocks never change across the grid: single-buffer them.
        return pl.BlockSpec(shape, lambda b: (0, 0), pipeline_mode=pl.Buffered(1))

    kernel = functools.partial(_self_attn_kernel, num_heads=num_heads)
    return pl.pallas_call(
        kernel,
        out_shape=jax.ShapeDtypeStruct((B, T, D), jnp.float32),
        grid=(B,),
        in_specs=[
            pl.BlockSpec((1, T, D), lambda b: (b, 0, 0)),    # x (q + kv + resid)
            pl.BlockSpec((1, 1, T), lambda b: (b, 0, 0)),    # key padding row
            const_spec((D, D)),                              # Wq
            const_spec((1, D)),                              # bq
            const_spec((D, 2 * D)),                          # Wk|Wv (pre-fused)
            const_spec((1, 2 * D)),                          # bk|bv
            const_spec((D, D)),                              # Wo
            const_spec((1, D)),                              # bo
            const_spec((1, D)),                              # gamma
            const_spec((1, D)),                              # beta
        ],
        out_specs=pl.BlockSpec((1, T, D), lambda b: (b, 0, 0)),
        compiler_params=pltpu.CompilerParams(
            dimension_semantics=("parallel",),
            vmem_limit_bytes=_VMEM_LIMIT),
    )(x, key_pad,
      p['Wq'], p['bq'].reshape(1, D),
      p['Wkv'], p['bkv'].reshape(1, 2 * D),
      p['Wo'], p['bo'].reshape(1, D),
      gamma.reshape(1, D), beta.reshape(1, D))


def cross_attn_block(p, x, enc, key_pad, gamma, beta, num_heads):
    """out = LayerNorm(x + MHA(q=x, k=enc, v=enc)); key_pad: (B,1,S) f32."""
    B, Tq, D = x.shape
    S = enc.shape[1]

    # Tile queries so the (B, q_tiles) grid gives both v7x TensorCores work and
    # some pipeline depth.  (K/V projection is recomputed per q tile; fine while
    # q_tiles is small -- see flash-tiling TODO at top.)
    tq = 128 if (Tq % 128 == 0) else Tq
    n_qt = Tq // tq

    def const_spec(shape):
        return pl.BlockSpec(shape, lambda b, qt: (0, 0), pipeline_mode=pl.Buffered(1))

    kernel = functools.partial(_cross_attn_kernel, num_heads=num_heads)
    return pl.pallas_call(
        kernel,
        out_shape=jax.ShapeDtypeStruct((B, Tq, D), jnp.float32),
        grid=(B, n_qt),
        in_specs=[
            pl.BlockSpec((1, tq, D), lambda b, qt: (b, qt, 0)),   # x q-tile
            pl.BlockSpec((1, S, D), lambda b, qt: (b, 0, 0)),     # encoder output
            pl.BlockSpec((1, 1, S), lambda b, qt: (b, 0, 0)),     # enc padding row
            const_spec((D, D)),                                   # Wq
            const_spec((1, D)),                                   # bq
            const_spec((D, 2 * D)),                               # Wk|Wv
            const_spec((1, 2 * D)),                               # bk|bv
            const_spec((D, D)),                                   # Wo
            const_spec((1, D)),                                   # bo
            const_spec((1, D)),                                   # gamma
            const_spec((1, D)),                                   # beta
        ],
        out_specs=pl.BlockSpec((1, tq, D), lambda b, qt: (b, qt, 0)),
        compiler_params=pltpu.CompilerParams(
            dimension_semantics=("parallel", "parallel"),
            vmem_limit_bytes=_VMEM_LIMIT),
    )(x, enc, key_pad,
      p['Wq'], p['bq'].reshape(1, D),
      p['Wkv'], p['bkv'].reshape(1, 2 * D),
      p['Wo'], p['bo'].reshape(1, D),
      gamma.reshape(1, D), beta.reshape(1, D))


def ffn_block(p, x, gamma, beta):
    """out = LayerNorm(x + FFN(x)); rows tiled (cdiv + padded tail), d_ff tiled as
    a reduction grid axis with an f32 accumulator scratch."""
    B, T, D = x.shape
    d_ff = p['W1'].shape[1]
    M = B * T
    x2 = x.reshape(M, D)

    # Row tile: 256 reaches ~63-85% of HBM roofline; pad the tail instead of
    # collapsing to one giant tile.
    tm = 256 if M >= 256 else max(8, ((M + 7) // 8) * 8)
    n_row = pl.cdiv(M, tm)
    M_pad = n_row * tm
    if M_pad != M:
        x2 = jnp.pad(x2, ((0, M_pad - M), (0, 0)))

    # d_ff reduction tile (lane-dim constraint: multiple of 128 or full).
    if d_ff % 512 == 0:
        tff = 512
    elif d_ff % 128 == 0:
        tff = 128
    else:
        tff = d_ff
    n_ff = d_ff // tff

    out = pl.pallas_call(
        _ffn_kernel,
        out_shape=jax.ShapeDtypeStruct((M_pad, D), jnp.float32),
        grid=(n_row, n_ff),
        in_specs=[
            pl.BlockSpec((tm, D), lambda i, k: (i, 0)),           # x rows (resident over k)
            pl.BlockSpec((D, tff), lambda i, k: (0, k)),          # W1 column tile
            pl.BlockSpec((1, tff), lambda i, k: (0, k)),          # b1 tile
            pl.BlockSpec((tff, D), lambda i, k: (k, 0)),          # W2 row tile
            pl.BlockSpec((1, D), lambda i, k: (0, 0),
                         pipeline_mode=pl.Buffered(1)),           # b2
            pl.BlockSpec((1, D), lambda i, k: (0, 0),
                         pipeline_mode=pl.Buffered(1)),           # gamma
            pl.BlockSpec((1, D), lambda i, k: (0, 0),
                         pipeline_mode=pl.Buffered(1)),           # beta
        ],
        out_specs=pl.BlockSpec((tm, D), lambda i, k: (i, 0)),
        scratch_shapes=[pltpu.VMEM((tm, D), jnp.float32)],        # f32 accumulator
        compiler_params=pltpu.CompilerParams(
            dimension_semantics=("parallel", "arbitrary"),
            vmem_limit_bytes=_VMEM_LIMIT),
    )(x2, p['W1'], p['b1'].reshape(1, d_ff), p['W2'], p['b2'].reshape(1, D),
      gamma.reshape(1, D), beta.reshape(1, D))

    if M_pad != M:
        out = out[:M]
    return out.reshape(B, T, D)


# ----------------------------- model forward --------------------------------

def _decoder_forward(params, target_token_ids, encoder_output,
                     encoder_padding_mask, target_padding_mask, num_heads):
    """Mirrors Decoder.forward (inference; dropout = identity)."""
    B, T = target_token_ids.shape
    D = params['embedding'].shape[1]
    S = encoder_output.shape[1]

    # Embedding lookup + sqrt(d_model) scaling + positional encoding (glue).
    x = params['embedding'][target_token_ids] * jnp.sqrt(jnp.float32(D))
    x = x + params['pe'][None, :T, :]

    # Per-batch key-padding rows (1.0 == masked); causal part is built in-kernel.
    enc_pad = encoder_padding_mask.reshape(B, 1, S).astype(jnp.float32)
    if target_padding_mask is not None:
        tgt_pad = target_padding_mask.reshape(B, 1, T).astype(jnp.float32)
    else:
        tgt_pad = jnp.zeros((B, 1, T), jnp.float32)

    for blk in params['blocks']:
        x = self_attn_block(blk['self_attn'], x, tgt_pad,
                            blk['g1'], blk['b1'], num_heads)
        x = cross_attn_block(blk['cross_attn'], x, encoder_output, enc_pad,
                             blk['g2'], blk['b2'], num_heads)
        x = ffn_block(blk['ffn'], x, blk['g3'], blk['b3'])
    return x


decoder_forward = jax.jit(_decoder_forward, static_argnums=(5,))


def make_positional_encoding(max_len, d_model):
    position = jnp.arange(max_len, dtype=jnp.float32)[:, None]
    div_term = jnp.exp(jnp.arange(0, d_model, 2, dtype=jnp.float32)
                       * (-math.log(10000.0) / d_model))
    pe = jnp.zeros((max_len, d_model), dtype=jnp.float32)
    pe = pe.at[:, 0::2].set(jnp.sin(position * div_term))
    pe = pe.at[:, 1::2].set(jnp.cos(position * div_term))
    return pe


# ----------------------------- pure-JAX reference --------------------------
# Mirrors the same mixed-precision policy (bf16 MXU operands, f32 accumulation,
# f32 softmax / LayerNorm) so the check is tight.

def _mmf(a, b):
    return jnp.dot(a.astype(jnp.bfloat16), b.astype(jnp.bfloat16),
                   preferred_element_type=jnp.float32)


def _ref_ln(z, g, b):
    mean = z.mean(-1, keepdims=True)
    var = jnp.square(z - mean).mean(-1, keepdims=True)
    return g * (z - mean) * jax.lax.rsqrt(var + 1e-5) + b


def _ref_mha(p, q_in, k_in, v_in, mask, num_heads):
    B, Sq, D = q_in.shape
    Sk = k_in.shape[1]
    dk = D // num_heads
    Wk, Wv = p['Wkv'][:, :D], p['Wkv'][:, D:]
    bk, bv = p['bkv'][:D], p['bkv'][D:]
    q = (_mmf(q_in, p['Wq']) + p['bq']).reshape(B, Sq, num_heads, dk).transpose(0, 2, 1, 3)
    k = (_mmf(k_in, Wk) + bk).reshape(B, Sk, num_heads, dk).transpose(0, 2, 1, 3)
    v = (_mmf(v_in, Wv) + bv).reshape(B, Sk, num_heads, dk).transpose(0, 2, 1, 3)
    scores = jnp.einsum('bhqd,bhkd->bhqk',
                        q.astype(jnp.bfloat16), k.astype(jnp.bfloat16),
                        preferred_element_type=jnp.float32) / math.sqrt(dk)
    scores = jnp.where(mask, jnp.float32(-1e9), scores)
    w = jax.nn.softmax(scores, axis=-1)
    ctx = jnp.einsum('bhqk,bhkd->bhqd',
                     w.astype(jnp.bfloat16), v.astype(jnp.bfloat16),
                     preferred_element_type=jnp.float32)
    concat = ctx.transpose(0, 2, 1, 3).reshape(B, Sq, D)
    return _mmf(concat, p['Wo']) + p['bo']


def reference_forward(params, target_token_ids, encoder_output,
                      encoder_padding_mask, num_heads, target_padding_mask=None):
    B, T = target_token_ids.shape
    D = params['embedding'].shape[1]
    x = params['embedding'][target_token_ids] * jnp.sqrt(jnp.float32(D))
    x = x + params['pe'][None, :T, :]
    causal = jnp.triu(jnp.ones((T, T), dtype=bool), k=1)[None, None]
    tgt_mask = causal if target_padding_mask is None \
        else jnp.logical_or(causal, target_padding_mask)
    for blk in params['blocks']:
        sa = _ref_mha(blk['self_attn'], x, x, x, tgt_mask, num_heads)
        x = _ref_ln(x + sa, blk['g1'], blk['b1'])
        ca = _ref_mha(blk['cross_attn'], x, encoder_output, encoder_output,
                      encoder_padding_mask, num_heads)
        x = _ref_ln(x + ca, blk['g2'], blk['b2'])
        h = jnp.maximum(_mmf(x, blk['ffn']['W1']) + blk['ffn']['b1'], 0.0)
        ff = _mmf(h, blk['ffn']['W2']) + blk['ffn']['b2']
        x = _ref_ln(x + ff, blk['g3'], blk['b3'])
    return x


# ----------------------------- parameter init ------------------------------

def init_params(key, vocab_size, d_model, d_ff, num_heads, n_layers, max_len):
    keys = iter(jax.random.split(key, 1 + n_layers * 20))

    def dense(fan_in, fan_out):
        bound = 1.0 / math.sqrt(fan_in)
        kw, kb = next(keys), next(keys)
        # Matmul weights stored in bf16 (MXU operands / halved weight DMA);
        # biases stay f32 (added to f32 accumulators).
        w = jax.random.uniform(kw, (fan_in, fan_out), jnp.float32,
                               -bound, bound).astype(jnp.bfloat16)
        b = jax.random.uniform(kb, (fan_out,), jnp.float32, -bound, bound)
        return w, b

    def mha():
        Wq, bq = dense(d_model, d_model)
        Wk, bk = dense(d_model, d_model)
        Wv, bv = dense(d_model, d_model)
        Wo, bo = dense(d_model, d_model)
        # Pre-concatenate K|V once at init time (no per-forward concat / HBM copy).
        return dict(Wq=Wq, bq=bq,
                    Wkv=jnp.concatenate([Wk, Wv], axis=1),
                    bkv=jnp.concatenate([bk, bv], axis=0),
                    Wo=Wo, bo=bo)

    embedding = jax.random.normal(next(keys), (vocab_size, d_model), jnp.float32)

    blocks = []
    for _ in range(n_layers):
        self_attn = mha()
        cross_attn = mha()
        W1, b1 = dense(d_model, d_ff)
        W2, b2 = dense(d_ff, d_model)
        blocks.append(dict(
            self_attn=self_attn,
            cross_attn=cross_attn,
            ffn=dict(W1=W1, b1=b1, W2=W2, b2=b2),
            g1=jnp.ones((d_model,), jnp.float32), b1=jnp.zeros((d_model,), jnp.float32),
            g2=jnp.ones((d_model,), jnp.float32), b2=jnp.zeros((d_model,), jnp.float32),
            g3=jnp.ones((d_model,), jnp.float32), b3=jnp.zeros((d_model,), jnp.float32),
        ))

    return dict(embedding=embedding,
                pe=make_positional_encoding(max_len, d_model),
                blocks=blocks)


# ----------------------------- main -----------------------------------------

if __name__ == "__main__":
    B, T, S = 2, 8, 8
    d_model, d_ff, num_heads, n_layers = 32, 64, 4, 2
    vocab_size, max_len = 50, 64

    key = jax.random.PRNGKey(0)
    k_par, k_tok, k_enc = jax.random.split(key, 3)

    params = init_params(k_par, vocab_size, d_model, d_ff, num_heads,
                         n_layers, max_len)

    target_token_ids = jax.random.randint(k_tok, (B, T), 0, vocab_size)
    encoder_output = jax.random.normal(k_enc, (B, S, d_model), jnp.float32)
    # True = masked position.  Mask the last source position (as padding).
    encoder_padding_mask = jnp.zeros((B, 1, 1, S), dtype=bool).at[:, :, :, -1].set(True)

    out = decoder_forward(params, target_token_ids, encoder_output,
                          encoder_padding_mask, None, num_heads)
    out = jax.block_until_ready(out)

    ref = reference_forward(params, target_token_ids, encoder_output,
                            encoder_padding_mask, num_heads)
    assert out.shape == (B, T, d_model)
    max_diff = float(jnp.max(jnp.abs(out - ref)))
    # Tolerance covers the approx-reciprocal softmax denominator and MXU vs XLA
    # accumulation-order differences; structural bugs would be O(1).
    assert max_diff < 2e-2, f"max abs diff {max_diff}"

    print("KERNEL_OK")
</pallas_src>

<mosaic_0001>
module attributes {stable_mosaic.version = 11 : i64} {
  func.func @_ffn_kernel(%arg0: i32, %arg1: i32, %arg2: memref<16x32xf32, #tpu.memory_space<vmem>>, %arg3: memref<32x64xbf16, #tpu.memory_space<vmem>>, %arg4: memref<1x64xf32, #tpu.memory_space<vmem>>, %arg5: memref<64x32xbf16, #tpu.memory_space<vmem>>, %arg6: memref<1x32xf32, #tpu.memory_space<vmem>>, %arg7: memref<1x32xf32, #tpu.memory_space<vmem>>, %arg8: memref<1x32xf32, #tpu.memory_space<vmem>>, %arg9: memref<16x32xf32, #tpu.memory_space<vmem>>, %arg10: memref<16x32xf32, #tpu.memory_space<vmem>>) attributes {dimension_semantics = [#tpu.dimension_semantics<parallel>, #tpu.dimension_semantics<arbitrary>], iteration_bounds = array<i64: 1, 1>, scalar_prefetch = 0 : i64, scratch_operands = 1 : i64, tpu.core_type = #tpu.core_type<tc>, window_params = [{transform_indices = @transform_0, window_bounds = array<i64: 16, 32>}, {transform_indices = @transform_1, window_bounds = array<i64: 32, 64>}, {transform_indices = @transform_2, window_bounds = array<i64: 1, 64>}, {transform_indices = @transform_3, window_bounds = array<i64: 64, 32>}, {pipeline_mode = #tpu.pipeline_mode<synchronous>, transform_indices = @transform_4, window_bounds = array<i64: 1, 32>}, {pipeline_mode = #tpu.pipeline_mode<synchronous>, transform_indices = @transform_5, window_bounds = array<i64: 1, 32>}, {pipeline_mode = #tpu.pipeline_mode<synchronous>, transform_indices = @transform_6, window_bounds = array<i64: 1, 32>}, {transform_indices = @transform_7, window_bounds = array<i64: 16, 32>}]} {
    %c0_i32 = arith.constant 0 : i32
    %0 = arith.cmpi eq, %arg1, %c0_i32 : i32
    %1 = arith.extui %0 : i1 to i32
    %c0_i32_0 = arith.constant 0 : i32
    %2 = arith.cmpi ne, %1, %c0_i32_0 : i32
    scf.if %2 {
      %cst_16 = arith.constant 0.000000e+00 : f32
      %21 = vector.broadcast %cst_16 : f32 to vector<16x32xf32>
      %c0_17 = arith.constant 0 : index
      %c0_18 = arith.constant 0 : index
      %22 = vector.load %arg10[%c0_17, %c0_18] : memref<16x32xf32, #tpu.memory_space<vmem>>, vector<16x32xf32>
      tpu.vector_store %arg10[%c0_17, %c0_18], %21 {strides = array<i32>} : memref<16x32xf32, #tpu.memory_space<vmem>>, vector<16x32xf32>,
    } else {
    }
    %c0 = arith.constant 0 : index
    %c0_1 = arith.constant 0 : index
    %3 = vector.load %arg2[%c0, %c0_1] : memref<16x32xf32, #tpu.memory_space<vmem>>, vector<16x32xf32>
    %4 = arith.truncf %3 : vector<16x32xf32> to vector<16x32xbf16>
    %c0_2 = arith.constant 0 : index
    %c0_3 = arith.constant 0 : index
    %5 = vector.load %arg3[%c0_2, %c0_3] : memref<32x64xbf16, #tpu.memory_space<vmem>>, vector<32x64xbf16>
    %cst = arith.constant dense<0.000000e+00> : vector<16x64xf32>
    %6 = tpu.matmul %4, %5, %cst {dimension_numbers = #tpu.dot_dimension_numbers<[1], [0], [0], [1], [0, 0, 1, 1], [], []>} : vector<16x32xbf16>, vector<32x64xbf16>, vector<16x64xf32> -> vector<16x64xf32>
    %c0_4 = arith.constant 0 : index
    %c0_5 = arith.constant 0 : index
    %7 = vector.load %arg4[%c0_4, %c0_5] : memref<1x64xf32, #tpu.memory_space<vmem>>, vector<1x64xf32>
    %8 = vector.broadcast %7 : vector<1x64xf32> to vector<16x64xf32>
    %9 = arith.addf %6, %8 : vector<16x64xf32>
    %cst_6 = arith.constant 0.000000e+00 : f32
    %10 = vector.broadcast %cst_6 : f32 to vector<16x64xf32>
    %11 = arith.maximumf %9, %10 : vector<16x64xf32>
    %c0_7 = arith.constant 0 : index
    %c0_8 = arith.constant 0 : index
    %12 = vector.load %arg10[%c0_7, %c0_8] : memref<16x32xf32, #tpu.memory_space<vmem>>, vector<16x32xf32>
    %13 = arith.truncf %11 : vector<16x64xf32> to vector<16x64xbf16>
    %c0_9 = arith.constant 0 : index
    %c0_10 = arith.constant 0 : index
    %14 = vector.load %arg5[%c0_9, %c0_10] : memref<64x32xbf16, #tpu.memory_space<vmem>>, vector<64x32xbf16>
    %cst_11 = arith.constant dense<0.000000e+00> : vector<16x32xf32>
    %15 = tpu.matmul %13, %14, %cst_11 {dimension_numbers = #tpu.dot_dimension_numbers<[1], [0], [0], [1], [0, 0, 1, 1], [], []>} : vector<16x64xbf16>, vector<64x32xbf16>, vector<16x32xf32> -> vector<16x32xf32>
    %16 = arith.addf %12, %15 : vector<16x32xf32>
    %c0_12 = arith.constant 0 : index
    %c0_13 = arith.constant 0 : index
    %17 = vector.load %arg10[%c0_12, %c0_13] : memref<16x32xf32, #tpu.memory_space<vmem>>, vector<16x32xf32>
    tpu.vector_store %arg10[%c0_12, %c0_13], %16 {strides = array<i32>} : memref<16x32xf32, #tpu.memory_space<vmem>>, vector<16x32xf32>,
    %c0_i32_14 = arith.constant 0 : i32
    %18 = arith.cmpi eq, %arg1, %c0_i32_14 : i32
    %19 = arith.extui %18 : i1 to i32
    %c0_i32_15 = arith.constant 0 : i32
    %20 = arith.cmpi ne, %19, %c0_i32_15 : i32
    scf.if %20 {
      %c0_16 = arith.constant 0 : index
      %c0_17 = arith.constant 0 : index
      %21 = vector.load %arg10[%c0_16, %c0_17] : memref<16x32xf32, #tpu.memory_space<vmem>>, vector<16x32xf32>
      %22 = arith.addf %3, %21 : vector<16x32xf32>
      %c0_18 = arith.constant 0 : index
      %c0_19 = arith.constant 0 : index
      %23 = vector.load %arg6[%c0_18, %c0_19] : memref<1x32xf32, #tpu.memory_space<vmem>>, vector<1x32xf32>
      %24 = vector.broadcast %23 : vector<1x32xf32> to vector<16x32xf32>
      %25 = arith.addf %22, %24 : vector<16x32xf32>
      %cst_20 = arith.constant dense<0.000000e+00> : vector<16xf32>
      %26 = vector.multi_reduction <add>, %25, %cst_20 [1] : vector<16x32xf32> to vector<16xf32>
      %27 = vector.shape_cast %26 : vector<16xf32> to vector<16x1xf32>
      %cst_21 = arith.constant 3.200000e+01 : f32
      %28 = vector.broadcast %cst_21 : f32 to vector<16x1xf32>
      %29 = arith.divf %27, %28 : vector<16x1xf32>
      %30 = vector.broadcast %29 : vector<16x1xf32> to vector<16x32xf32>
      %31 = arith.subf %25, %30 : vector<16x32xf32>
      %32 = arith.mulf %31, %31 : vector<16x32xf32>
      %cst_22 = arith.constant dense<0.000000e+00> : vector<16xf32>
      %33 = vector.multi_reduction <add>, %32, %cst_22 [1] : vector<16x32xf32> to vector<16xf32>
      %34 = vector.shape_cast %33 : vector<16xf32> to vector<16x1xf32>
      %cst_23 = arith.constant 3.200000e+01 : f32
      %35 = vector.broadcast %cst_23 : f32 to vector<16x1xf32>
      %36 = arith.divf %34, %35 : vector<16x1xf32>
      %c0_24 = arith.constant 0 : index
      %c0_25 = arith.constant 0 : index
      %37 = vector.load %arg7[%c0_24, %c0_25] : memref<1x32xf32, #tpu.memory_space<vmem>>, vector<1x32xf32>
      %38 = vector.broadcast %29 : vector<16x1xf32> to vector<16x32xf32>
      %39 = arith.subf %25, %38 : vector<16x32xf32>
      %cst_26 = arith.constant 9.99999974E-6 : f32
      %40 = vector.broadcast %cst_26 : f32 to vector<16x1xf32>
      %41 = arith.addf %36, %40 : vector<16x1xf32>
      %42 = math.rsqrt %41 : vector<16x1xf32>
      %43 = vector.broadcast %42 : vector<16x1xf32> to vector<16x32xf32>
      %44 = arith.mulf %39, %43 : vector<16x32xf32>
      %45 = vector.broadcast %37 : vector<1x32xf32> to vector<16x32xf32>
      %46 = arith.mulf %45, %44 : vector<16x32xf32>
      %c0_27 = arith.constant 0 : index
      %c0_28 = arith.constant 0 : index
      %47 = vector.load %arg8[%c0_27, %c0_28] : memref<1x32xf32, #tpu.memory_space<vmem>>, vector<1x32xf32>
      %48 = vector.broadcast %47 : vector<1x32xf32> to vector<16x32xf32>
      %49 = arith.addf %46, %48 : vector<16x32xf32>
      %c0_29 = arith.constant 0 : index
      %c0_30 = arith.constant 0 : index
      %50 = vector.load %arg9[%c0_29, %c0_30] : memref<16x32xf32, #tpu.memory_space<vmem>>, vector<16x32xf32>
      tpu.vector_store %arg9[%c0_29, %c0_30], %49 {strides = array<i32>} : memref<16x32xf32, #tpu.memory_space<vmem>>, vector<16x32xf32>,
    } else {
    }
    return
  }
  func.func @transform_0(%arg0: i32, %arg1: i32) -> (i32, i32) {
    %c0_i32 = arith.constant 0 : i32
    %c0_i32_0 = arith.constant 0 : i32
    return %arg0, %c0_i32 : i32, i32
  }
  func.func @transform_1(%arg0: i32, %arg1: i32) -> (i32, i32) {
    %c0_i32 = arith.constant 0 : i32
    %c0_i32_0 = arith.constant 0 : i32
    return %c0_i32, %arg1 : i32, i32
  }
  func.func @transform_2(%arg0: i32, %arg1: i32) -> (i32, i32) {
    %c0_i32 = arith.constant 0 : i32
    %c0_i32_0 = arith.constant 0 : i32
    return %c0_i32, %arg1 : i32, i32
  }
  func.func @transform_3(%arg0: i32, %arg1: i32) -> (i32, i32) {
    %c0_i32 = arith.constant 0 : i32
    %c0_i32_0 = arith.constant 0 : i32
    return %arg1, %c0_i32 : i32, i32
  }
  func.func @transform_4(%arg0: i32, %arg1: i32) -> (i32, i32) {
    %c0_i32 = arith.constant 0 : i32
    %c0_i32_0 = arith.constant 0 : i32
    %c0_i32_1 = arith.constant 0 : i32
    return %c0_i32, %c0_i32_0 : i32, i32
  }
  func.func @transform_5(%arg0: i32, %arg1: i32) -> (i32, i32) {
    %c0_i32 = arith.constant 0 : i32
    %c0_i32_0 = arith.constant 0 : i32
    %c0_i32_1 = arith.constant 0 : i32
    return %c0_i32, %c0_i32_0 : i32, i32
  }
  func.func @transform_6(%arg0: i32, %arg1: i32) -> (i32, i32) {
    %c0_i32 = arith.constant 0 : i32
    %c0_i32_0 = arith.constant 0 : i32
    %c0_i32_1 = arith.constant 0 : i32
    return %c0_i32, %c0_i32_0 : i32, i32
  }
  func.func @transform_7(%arg0: i32, %arg1: i32) -> (i32, i32) {
    %c0_i32 = arith.constant 0 : i32
    %c0_i32_0 = arith.constant 0 : i32
    return %arg0, %c0_i32 : i32, i32
  }
}

module attributes {stable_mosaic.version = 11 : i64} {
  func.func @_self_attn_kernel(%arg0: i32, %arg1: memref<1x8x32xf32, #tpu.memory_space<vmem>>, %arg2: memref<1x1x8xf32, #tpu.memory_space<vmem>>, %arg3: memref<32x32xbf16, #tpu.memory_space<vmem>>, %arg4: memref<1x32xf32, #tpu.memory_space<vmem>>, %arg5: memref<32x64xbf16, #tpu.memory_space<vmem>>, %arg6: memref<1x64xf32, #tpu.memory_space<vmem>>, %arg7: memref<32x32xbf16, #tpu.memory_space<vmem>>, %arg8: memref<1x32xf32, #tpu.memory_space<vmem>>, %arg9: memref<1x32xf32, #tpu.memory_space<vmem>>, %arg10: memref<1x32xf32, #tpu.memory_space<vmem>>, %arg11: memref<1x8x32xf32, #tpu.memory_space<vmem>>) attributes {dimension_semantics = [#tpu.dimension_semantics<parallel>], iteration_bounds = array<i64: 2>, scalar_prefetch = 0 : i64, scratch_operands = 0 : i64, tpu.core_type = #tpu.core_type<tc>, window_params = [{transform_indices = @transform_0, window_bounds = array<i64: 1, 8, 32>}, {transform_indices = @transform_1, window_bounds = array<i64: 1, 1, 8>}, {pipeline_mode = #tpu.pipeline_mode<synchronous>, transform_indices = @transform_2, window_bounds = array<i64: 32, 32>}, {pipeline_mode = #tpu.pipeline_mode<synchronous>, transform_indices = @transform_3, window_bounds = array<i64: 1, 32>}, {pipeline_mode = #tpu.pipeline_mode<synchronous>, transform_indices = @transform_4, window_bounds = array<i64: 32, 64>}, {pipeline_mode = #tpu.pipeline_mode<synchronous>, transform_indices = @transform_5, window_bounds = array<i64: 1, 64>}, {pipeline_mode = #tpu.pipeline_mode<synchronous>, transform_indices = @transform_6, window_bounds = array<i64: 32, 32>}, {pipeline_mode = #tpu.pipeline_mode<synchronous>, transform_indices = @transform_7, window_bounds = array<i64: 1, 32>}, {pipeline_mode = #tpu.pipeline_mode<synchronous>, transform_indices = @transform_8, window_bounds = array<i64: 1, 32>}, {pipeline_mode = #tpu.pipeline_mode<synchronous>, transform_indices = @transform_9, window_bounds = array<i64: 1, 32>}, {transform_indices = @transform_10, window_bounds = array<i64: 1, 8, 32>}]} {
    %c0 = arith.constant 0 : index
    %c0_0 = arith.constant 0 : index
    %c0_1 = arith.constant 0 : index
    %0 = vector.load %arg1[%c0, %c0_0, %c0_1] : memref<1x8x32xf32, #tpu.memory_space<vmem>>, vector<1x8x32xf32>
    %1 = vector.shape_cast %0 : vector<1x8x32xf32> to vector<8x32xf32>
    %c0_2 = arith.constant 0 : index
    %c0_3 = arith.constant 0 : index
    %c0_4 = arith.constant 0 : index
    %2 = vector.load %arg2[%c0_2, %c0_3, %c0_4] : memref<1x1x8xf32, #tpu.memory_space<vmem>>, vector<1x1x8xf32>
    %3 = vector.shape_cast %2 : vector<1x1x8xf32> to vector<1x8xf32>
    %4 = arith.truncf %1 : vector<8x32xf32> to vector<8x32xbf16>
    %c0_5 = arith.constant 0 : index
    %c0_6 = arith.constant 0 : index
    %5 = vector.load %arg3[%c0_5, %c0_6] : memref<32x32xbf16, #tpu.memory_space<vmem>>, vector<32x32xbf16>
    %cst = arith.constant dense<0.000000e+00> : vector<8x32xf32>
    %6 = tpu.matmul %4, %5, %cst {dimension_numbers = #tpu.dot_dimension_numbers<[1], [0], [0], [1], [0, 0, 1, 1], [], []>} : vector<8x32xbf16>, vector<32x32xbf16>, vector<8x32xf32> -> vector<8x32xf32>
    %c0_7 = arith.constant 0 : index
    %c0_8 = arith.constant 0 : index
    %7 = vector.load %arg4[%c0_7, %c0_8] : memref<1x32xf32, #tpu.memory_space<vmem>>, vector<1x32xf32>
    %8 = vector.broadcast %7 : vector<1x32xf32> to vector<8x32xf32>
    %9 = arith.addf %6, %8 : vector<8x32xf32>
    %10 = arith.truncf %1 : vector<8x32xf32> to vector<8x32xbf16>
    %c0_9 = arith.constant 0 : index
    %c0_10 = arith.constant 0 : index
    %11 = vector.load %arg5[%c0_9, %c0_10] : memref<32x64xbf16, #tpu.memory_space<vmem>>, vector<32x64xbf16>
    %cst_11 = arith.constant dense<0.000000e+00> : vector<8x64xf32>
    %12 = tpu.matmul %10, %11, %cst_11 {dimension_numbers = #tpu.dot_dimension_numbers<[1], [0], [0], [1], [0, 0, 1, 1], [], []>} : vector<8x32xbf16>, vector<32x64xbf16>, vector<8x64xf32> -> vector<8x64xf32>
    %c0_12 = arith.constant 0 : index
    %c0_13 = arith.constant 0 : index
    %13 = vector.load %arg6[%c0_12, %c0_13] : memref<1x64xf32, #tpu.memory_space<vmem>>, vector<1x64xf32>
    %14 = vector.broadcast %13 : vector<1x64xf32> to vector<8x64xf32>
    %15 = arith.addf %12, %14 : vector<8x64xf32>
    %16 = vector.extract_strided_slice %15 {offsets = [0, 0], sizes = [8, 32], strides = [1, 1]} : vector<8x64xf32> to vector<8x32xf32>
    %17 = vector.extract_strided_slice %15 {offsets = [0, 32], sizes = [8, 32], strides = [1, 1]} : vector<8x64xf32> to vector<8x32xf32>
    %18 = vector.shape_cast %3 : vector<1x8xf32> to vector<1x8xf32>
    %19 = vector.broadcast %18 : vector<1x8xf32> to vector<8x8xf32>
    %cst_14 = arith.constant 5.000000e-01 : f32
    %20 = vector.broadcast %cst_14 : f32 to vector<8x8xf32>
    %21 = arith.cmpf ogt, %19, %20 : vector<8x8xf32>
    %22 = tpu.iota {dimensions = array<i32: 0>} : vector<8x8xi32>
    %23 = tpu.iota {dimensions = array<i32: 1>} : vector<8x8xi32>
    %24 = arith.cmpi sgt, %23, %22 : vector<8x8xi32>
    %25 = arith.ori %21, %24 : vector<8x8xi1>
    %26 = vector.extract_strided_slice %9 {offsets = [0, 0], sizes = [8, 8], strides = [1, 1]} : vector<8x32xf32> to vector<8x8xf32>
    %27 = arith.truncf %26 : vector<8x8xf32> to vector<8x8xbf16>
    %28 = vector.extract_strided_slice %16 {offsets = [0, 0], sizes = [8, 8], strides = [1, 1]} : vector<8x32xf32> to vector<8x8xf32>
    %29 = arith.truncf %28 : vector<8x8xf32> to vector<8x8xbf16>
    %30 = vector.extract_strided_slice %17 {offsets = [0, 0], sizes = [8, 8], strides = [1, 1]} : vector<8x32xf32> to vector<8x8xf32>
    %31 = arith.truncf %30 : vector<8x8xf32> to vector<8x8xbf16>
    %cst_15 = arith.constant dense<0.000000e+00> : vector<8x8xf32>
    %32 = tpu.matmul %27, %29, %cst_15 {dimension_numbers = #tpu.dot_dimension_numbers<[1], [1], [0], [0], [0, 0, 1, 0], [], []>} : vector<8x8xbf16>, vector<8x8xbf16>, vector<8x8xf32> -> vector<8x8xf32>
    %cst_16 = arith.constant 0.353553385 : f32
    %33 = vector.broadcast %cst_16 : f32 to vector<8x8xf32>
    %34 = arith.mulf %32, %33 : vector<8x8xf32>
    %cst_17 = arith.constant -1.000000e+09 : f32
    %35 = vector.broadcast %cst_17 : f32 to vector<8x8xf32>
    %36 = arith.select %25, %35, %34 : vector<8x8xi1>, vector<8x8xf32>
    %cst_18 = arith.constant dense<0xFF800000> : vector<8xf32>
    %37 = vector.multi_reduction <maximumf>, %36, %cst_18 [1] : vector<8x8xf32> to vector<8xf32>
    %38 = vector.shape_cast %37 : vector<8xf32> to vector<8x1xf32>
    %39 = vector.broadcast %38 : vector<8x1xf32> to vector<8x8xf32>
    %40 = arith.subf %36, %39 : vector<8x8xf32>
    %41 = math.exp %40 : vector<8x8xf32>
    %cst_19 = arith.constant dense<0.000000e+00> : vector<8xf32>
    %42 = vector.multi_reduction <add>, %41, %cst_19 [1] : vector<8x8xf32> to vector<8xf32>
    %43 = vector.shape_cast %42 : vector<8xf32> to vector<8x1xf32>
    %44 = tpu.reciprocal %43 {approx = true} : vector<8x1xf32> -> vector<8x1xf32>
    %45 = vector.broadcast %44 : vector<8x1xf32> to vector<8x8xf32>
    %46 = arith.mulf %41, %45 : vector<8x8xf32>
    %47 = arith.truncf %46 : vector<8x8xf32> to vector<8x8xbf16>
    %cst_20 = arith.constant dense<0.000000e+00> : vector<8x8xf32>
    %48 = tpu.matmul %47, %31, %cst_20 {dimension_numbers = #tpu.dot_dimension_numbers<[1], [0], [0], [1], [0, 0, 1, 1], [], []>} : vector<8x8xbf16>, vector<8x8xbf16>, vector<8x8xf32> -> vector<8x8xf32>
    %49 = vector.extract_strided_slice %9 {offsets = [0, 8], sizes = [8, 8], strides = [1, 1]} : vector<8x32xf32> to vector<8x8xf32>
    %50 = arith.truncf %49 : vector<8x8xf32> to vector<8x8xbf16>
    %51 = vector.extract_strided_slice %16 {offsets = [0, 8], sizes = [8, 8], strides = [1, 1]} : vector<8x32xf32> to vector<8x8xf32>
    %52 = arith.truncf %51 : vector<8x8xf32> to vector<8x8xbf16>
    %53 = vector.extract_strided_slice %17 {offsets = [0, 8], sizes = [8, 8], strides = [1, 1]} : vector<8x32xf32> to vector<8x8xf32>
    %54 = arith.truncf %53 : vector<8x8xf32> to vector<8x8xbf16>
    %cst_21 = arith.constant dense<0.000000e+00> : vector<8x8xf32>
    %55 = tpu.matmul %50, %52, %cst_21 {dimension_numbers = #tpu.dot_dimension_numbers<[1], [1], [0], [0], [0, 0, 1, 0], [], []>} : vector<8x8xbf16>, vector<8x8xbf16>, vector<8x8xf32> -> vector<8x8xf32>
    %cst_22 = arith.constant 0.353553385 : f32
    %56 = vector.broadcast %cst_22 : f32 to vector<8x8xf32>
    %57 = arith.mulf %55, %56 : vector<8x8xf32>
    %cst_23 = arith.constant -1.000000e+09 : f32
    %58 = vector.broadcast %cst_23 : f32 to vector<8x8xf32>
    %59 = arith.select %25, %58, %57 : vector<8x8xi1>, vector<8x8xf32>
    %cst_24 = arith.constant dense<0xFF800000> : vector<8xf32>
    %60 = vector.multi_reduction <maximumf>, %59, %cst_24 [1] : vector<8x8xf32> to vector<8xf32>
    %61 = vector.shape_cast %60 : vector<8xf32> to vector<8x1xf32>
    %62 = vector.broadcast %61 : vector<8x1xf32> to vector<8x8xf32>
    %63 = arith.subf %59, %62 : vector<8x8xf32>
    %64 = math.exp %63 : vector<8x8xf32>
    %cst_25 = arith.constant dense<0.000000e+00> : vector<8xf32>
    %65 = vector.multi_reduction <add>, %64, %cst_25 [1] : vector<8x8xf32> to vector<8xf32>
    %66 = vector.shape_cast %65 : vector<8xf32> to vector<8x1xf32>
    %67 = tpu.reciprocal %66 {approx = true} : vector<8x1xf32> -> vector<8x1xf32>
    %68 = vector.broadcast %67 : vector<8x1xf32> to vector<8x8xf32>
    %69 = arith.mulf %64, %68 : vector<8x8xf32>
    %70 = arith.truncf %69 : vector<8x8xf32> to vector<8x8xbf16>
    %cst_26 = arith.constant dense<0.000000e+00> : vector<8x8xf32>
    %71 = tpu.matmul %70, %54, %cst_26 {dimension_numbers = #tpu.dot_dimension_numbers<[1], [0], [0], [1], [0, 0, 1, 1], [], []>} : vector<8x8xbf16>, vector<8x8xbf16>, vector<8x8xf32> -> vector<8x8xf32>
    %72 = vector.extract_strided_slice %9 {offsets = [0, 16], sizes = [8, 8], strides = [1, 1]} : vector<8x32xf32> to vector<8x8xf32>
    %73 = arith.truncf %72 : vector<8x8xf32> to vector<8x8xbf16>
    %74 = vector.extract_strided_slice %16 {offsets = [0, 16], sizes = [8, 8], strides = [1, 1]} : vector<8x32xf32> to vector<8x8xf32>
    %75 = arith.truncf %74 : vector<8x8xf32> to vector<8x8xbf16>
    %76 = vector.extract_strided_slice %17 {offsets = [0, 16], sizes = [8, 8], strides = [1, 1]} : vector<8x32xf32> to vector<8x8xf32>
    %77 = arith.truncf %76 : vector<8x8xf32> to vector<8x8xbf16>
    %cst_27 = arith.constant dense<0.000000e+00> : vector<8x8xf32>
    %78 = tpu.matmul %73, %75, %cst_27 {dimension_numbers = #tpu.dot_dimension_numbers<[1], [1], [0], [0], [0, 0, 1, 0], [], []>} : vector<8x8xbf16>, vector<8x8xbf16>, vector<8x8xf32> -> vector<8x8xf32>
    %cst_28 = arith.constant 0.353553385 : f32
    %79 = vector.broadcast %cst_28 : f32 to vector<8x8xf32>
    %80 = arith.mulf %78, %79 : vector<8x8xf32>
    %cst_29 = arith.constant -1.000000e+09 : f32
    %81 = vector.broadcast %cst_29 : f32 to vector<8x8xf32>
    %82 = arith.select %25, %81, %80 : vector<8x8xi1>, vector<8x8xf32>
    %cst_30 = arith.constant dense<0xFF800000> : vector<8xf32>
    %83 = vector.multi_reduction <maximumf>, %82, %cst_30 [1] : vector<8x8xf32> to vector<8xf32>
    %84 = vector.shape_cast %83 : vector<8xf32> to vector<8x1xf32>
    %85 = vector.broadcast %84 : vector<8x1xf32> to vector<8x8xf32>
    %86 = arith.subf %82, %85 : vector<8x8xf32>
    %87 = math.exp %86 : vector<8x8xf32>
    %cst_31 = arith.constant dense<0.000000e+00> : vector<8xf32>
    %88 = vector.multi_reduction <add>, %87, %cst_31 [1] : vector<8x8xf32> to vector<8xf32>
    %89 = vector.shape_cast %88 : vector<8xf32> to vector<8x1xf32>
    %90 = tpu.reciprocal %89 {approx = true} : vector<8x1xf32> -> vector<8x1xf32>
    %91 = vector.broadcast %90 : vector<8x1xf32> to vector<8x8xf32>
    %92 = arith.mulf %87, %91 : vector<8x8xf32>
    %93 = arith.truncf %92 : vector<8x8xf32> to vector<8x8xbf16>
    %cst_32 = arith.constant dense<0.000000e+00> : vector<8x8xf32>
    %94 = tpu.matmul %93, %77, %cst_32 {dimension_numbers = #tpu.dot_dimension_numbers<[1], [0], [0], [1], [0, 0, 1, 1], [], []>} : vector<8x8xbf16>, vector<8x8xbf16>, vector<8x8xf32> -> vector<8x8xf32>
    %95 = vector.extract_strided_slice %9 {offsets = [0, 24], sizes = [8, 8], strides = [1, 1]} : vector<8x32xf32> to vector<8x8xf32>
    %96 = arith.truncf %95 : vector<8x8xf32> to vector<8x8xbf16>
    %97 = vector.extract_strided_slice %16 {offsets = [0, 24], sizes = [8, 8], strides = [1, 1]} : vector<8x32xf32> to vector<8x8xf32>
    %98 = arith.truncf %97 : vector<8x8xf32> to vector<8x8xbf16>
    %99 = vector.extract_strided_slice %17 {offsets = [0, 24], sizes = [8, 8], strides = [1, 1]} : vector<8x32xf32> to vector<8x8xf32>
    %100 = arith.truncf %99 : vector<8x8xf32> to vector<8x8xbf16>
    %cst_33 = arith.constant dense<0.000000e+00> : vector<8x8xf32>
    %101 = tpu.matmul %96, %98, %cst_33 {dimension_numbers = #tpu.dot_dimension_numbers<[1], [1], [0], [0], [0, 0, 1, 0], [], []>} : vector<8x8xbf16>, vector<8x8xbf16>, vector<8x8xf32> -> vector<8x8xf32>
    %cst_34 = arith.constant 0.353553385 : f32
    %102 = vector.broadcast %cst_34 : f32 to vector<8x8xf32>
    %103 = arith.mulf %101, %102 : vector<8x8xf32>
    %cst_35 = arith.constant -1.000000e+09 : f32
    %104 = vector.broadcast %cst_35 : f32 to vector<8x8xf32>
    %105 = arith.select %25, %104, %103 : vector<8x8xi1>, vector<8x8xf32>
    %cst_36 = arith.constant dense<0xFF800000> : vector<8xf32>
    %106 = vector.multi_reduction <maximumf>, %105, %cst_36 [1] : vector<8x8xf32> to vector<8xf32>
    %107 = vector.shape_cast %106 : vector<8xf32> to vector<8x1xf32>
    %108 = vector.broadcast %107 : vector<8x1xf32> to vector<8x8xf32>
    %109 = arith.subf %105, %108 : vector<8x8xf32>
    %110 = math.exp %109 : vector<8x8xf32>
    %cst_37 = arith.constant dense<0.000000e+00> : vector<8xf32>
    %111 = vector.multi_reduction <add>, %110, %cst_37 [1] : vector<8x8xf32> to vector<8xf32>
    %112 = vector.shape_cast %111 : vector<8xf32> to vector<8x1xf32>
    %113 = tpu.reciprocal %112 {approx = true} : vector<8x1xf32> -> vector<8x1xf32>
    %114 = vector.broadcast %113 : vector<8x1xf32> to vector<8x8xf32>
    %115 = arith.mulf %110, %114 : vector<8x8xf32>
    %116 = arith.truncf %115 : vector<8x8xf32> to vector<8x8xbf16>
    %cst_38 = arith.constant dense<0.000000e+00> : vector<8x8xf32>
    %117 = tpu.matmul %116, %100, %cst_38 {dimension_numbers = #tpu.dot_dimension_numbers<[1], [0], [0], [1], [0, 0, 1, 1], [], []>} : vector<8x8xbf16>, vector<8x8xbf16>, vector<8x8xf32> -> vector<8x8xf32>
    %118 = tpu.concatenate %48, %71, %94, %117 in 1 : vector<8x8xf32>, vector<8x8xf32>, vector<8x8xf32>, vector<8x8xf32> -> vector<8x32xf32>
    %119 = arith.truncf %118 : vector<8x32xf32> to vector<8x32xbf16>
    %c0_39 = arith.constant 0 : index
    %c0_40 = arith.constant 0 : index
    %120 = vector.load %arg7[%c0_39, %c0_40] : memref<32x32xbf16, #tpu.memory_space<vmem>>, vector<32x32xbf16>
    %cst_41 = arith.constant dense<0.000000e+00> : vector<8x32xf32>
    %121 = tpu.matmul %119, %120, %cst_41 {dimension_numbers = #tpu.dot_dimension_numbers<[1], [0], [0], [1], [0, 0, 1, 1], [], []>} : vector<8x32xbf16>, vector<32x32xbf16>, vector<8x32xf32> -> vector<8x32xf32>
    %c0_42 = arith.constant 0 : index
    %c0_43 = arith.constant 0 : index
    %122 = vector.load %arg8[%c0_42, %c0_43] : memref<1x32xf32, #tpu.memory_space<vmem>>, vector<1x32xf32>
    %123 = vector.broadcast %122 : vector<1x32xf32> to vector<8x32xf32>
    %124 = arith.addf %121, %123 : vector<8x32xf32>
    %125 = arith.addf %1, %124 : vector<8x32xf32>
    %cst_44 = arith.constant dense<0.000000e+00> : vector<8xf32>
    %126 = vector.multi_reduction <add>, %125, %cst_44 [1] : vector<8x32xf32> to vector<8xf32>
    %127 = vector.shape_cast %126 : vector<8xf32> to vector<8x1xf32>
    %cst_45 = arith.constant 3.200000e+01 : f32
    %128 = vector.broadcast %cst_45 : f32 to vector<8x1xf32>
    %129 = arith.divf %127, %128 : vector<8x1xf32>
    %130 = vector.broadcast %129 : vector<8x1xf32> to vector<8x32xf32>
    %131 = arith.subf %125, %130 : vector<8x32xf32>
    %132 = arith.mulf %131, %131 : vector<8x32xf32>
    %cst_46 = arith.constant dense<0.000000e+00> : vector<8xf32>
    %133 = vector.multi_reduction <add>, %132, %cst_46 [1] : vector<8x32xf32> to vector<8xf32>
    %134 = vector.shape_cast %133 : vector<8xf32> to vector<8x1xf32>
    %cst_47 = arith.constant 3.200000e+01 : f32
    %135 = vector.broadcast %cst_47 : f32 to vector<8x1xf32>
    %136 = arith.divf %134, %135 : vector<8x1xf32>
    %137 = vector.broadcast %129 : vector<8x1xf32> to vector<8x32xf32>
    %138 = arith.subf %125, %137 : vector<8x32xf32>
    %cst_48 = arith.constant 9.99999974E-6 : f32
    %139 = vector.broadcast %cst_48 : f32 to vector<8x1xf32>
    %140 = arith.addf %136, %139 : vector<8x1xf32>
    %141 = math.rsqrt %140 : vector<8x1xf32>
    %142 = vector.broadcast %141 : vector<8x1xf32> to vector<8x32xf32>
    %143 = arith.mulf %138, %142 : vector<8x32xf32>
    %c0_49 = arith.constant 0 : index
    %c0_50 = arith.constant 0 : index
    %144 = vector.load %arg9[%c0_49, %c0_50] : memref<1x32xf32, #tpu.memory_space<vmem>>, vector<1x32xf32>
    %145 = vector.broadcast %144 : vector<1x32xf32> to vector<8x32xf32>
    %146 = arith.mulf %145, %143 : vector<8x32xf32>
    %c0_51 = arith.constant 0 : index
    %c0_52 = arith.constant 0 : index
    %147 = vector.load %arg10[%c0_51, %c0_52] : memref<1x32xf32, #tpu.memory_space<vmem>>, vector<1x32xf32>
    %148 = vector.broadcast %147 : vector<1x32xf32> to vector<8x32xf32>
    %149 = arith.addf %146, %148 : vector<8x32xf32>
    %c0_53 = arith.constant 0 : index
    %c0_54 = arith.constant 0 : index
    %c0_55 = arith.constant 0 : index
    %150 = vector.load %arg11[%c0_53, %c0_54, %c0_55] : memref<1x8x32xf32, #tpu.memory_space<vmem>>, vector<1x8x32xf32>
    %151 = vector.shape_cast %150 : vector<1x8x32xf32> to vector<8x32xf32>
    %152 = vector.shape_cast %149 : vector<8x32xf32> to vector<1x8x32xf32>
    tpu.vector_store %arg11[%c0_53, %c0_54, %c0_55], %152 {strides = array<i32>} : memref<1x8x32xf32, #tpu.memory_space<vmem>>, vector<1x8x32xf32>,
    return
  }
  func.func @transform_0(%arg0: i32) -> (i32, i32, i32) {
    %c0_i32 = arith.constant 0 : i32
    %c0_i32_0 = arith.constant 0 : i32
    %c0_i32_1 = arith.constant 0 : i32
    return %arg0, %c0_i32, %c0_i32_0 : i32, i32, i32
  }
  func.func @transform_1(%arg0: i32) -> (i32, i32, i32) {
    %c0_i32 = arith.constant 0 : i32
    %c0_i32_0 = arith.constant 0 : i32
    %c0_i32_1 = arith.constant 0 : i32
    return %arg0, %c0_i32, %c0_i32_0 : i32, i32, i32
  }
  func.func @transform_2(%arg0: i32) -> (i32, i32) {
    %c0_i32 = arith.constant 0 : i32
    %c0_i32_0 = arith.constant 0 : i32
    %c0_i32_1 = arith.constant 0 : i32
    return %c0_i32, %c0_i32_0 : i32, i32
  }
  func.func @transform_3(%arg0: i32) -> (i32, i32) {
    %c0_i32 = arith.constant 0 : i32
    %c0_i32_0 = arith.constant 0 : i32
    %c0_i32_1 = arith.constant 0 : i32
    return %c0_i32, %c0_i32_0 : i32, i32
  }
  func.func @transform_4(%arg0: i32) -> (i32, i32) {
    %c0_i32 = arith.constant 0 : i32
    %c0_i32_0 = arith.constant 0 : i32
    %c0_i32_1 = arith.constant 0 : i32
    return %c0_i32, %c0_i32_0 : i32, i32
  }
  func.func @transform_5(%arg0: i32) -> (i32, i32) {
    %c0_i32 = arith.constant 0 : i32
    %c0_i32_0 = arith.constant 0 : i32
    %c0_i32_1 = arith.constant 0 : i32
    return %c0_i32, %c0_i32_0 : i32, i32
  }
  func.func @transform_6(%arg0: i32) -> (i32, i32) {
    %c0_i32 = arith.constant 0 : i32
    %c0_i32_0 = arith.constant 0 : i32
    %c0_i32_1 = arith.constant 0 : i32
    return %c0_i32, %c0_i32_0 : i32, i32
  }
  func.func @transform_7(%arg0: i32) -> (i32, i32) {
    %c0_i32 = arith.constant 0 : i32
    %c0_i32_0 = arith.constant 0 : i32
    %c0_i32_1 = arith.constant 0 : i32
    return %c0_i32, %c0_i32_0 : i32, i32
  }
  func.func @transform_8(%arg0: i32) -> (i32, i32) {
    %c0_i32 = arith.constant 0 : i32
    %c0_i32_0 = arith.constant 0 : i32
    %c0_i32_1 = arith.constant 0 : i32
    return %c0_i32, %c0_i32_0 : i32, i32
  }
  func.func @transform_9(%arg0: i32) -> (i32, i32) {
    %c0_i32 = arith.constant 0 : i32
    %c0_i32_0 = arith.constant 0 : i32
    %c0_i32_1 = arith.constant 0 : i32
    return %c0_i32, %c0_i32_0 : i32, i32
  }
  func.func @transform_10(%arg0: i32) -> (i32, i32, i32) {
    %c0_i32 = arith.constant 0 : i32
    %c0_i32_0 = arith.constant 0 : i32
    %c0_i32_1 = arith.constant 0 : i32
    return %arg0, %c0_i32, %c0_i32_0 : i32, i32, i32
  }
}

module attributes {stable_mosaic.version = 11 : i64} {
  func.func @_cross_attn_kernel(%arg0: i32, %arg1: i32, %arg2: memref<1x8x32xf32, #tpu.memory_space<vmem>>, %arg3: memref<1x8x32xf32, #tpu.memory_space<vmem>>, %arg4: memref<1x1x8xf32, #tpu.memory_space<vmem>>, %arg5: memref<32x32xbf16, #tpu.memory_space<vmem>>, %arg6: memref<1x32xf32, #tpu.memory_space<vmem>>, %arg7: memref<32x64xbf16, #tpu.memory_space<vmem>>, %arg8: memref<1x64xf32, #tpu.memory_space<vmem>>, %arg9: memref<32x32xbf16, #tpu.memory_space<vmem>>, %arg10: memref<1x32xf32, #tpu.memory_space<vmem>>, %arg11: memref<1x32xf32, #tpu.memory_space<vmem>>, %arg12: memref<1x32xf32, #tpu.memory_space<vmem>>, %arg13: memref<1x8x32xf32, #tpu.memory_space<vmem>>) attributes {dimension_semantics = [#tpu.dimension_semantics<parallel>, #tpu.dimension_semantics<parallel>], iteration_bounds = array<i64: 2, 1>, scalar_prefetch = 0 : i64, scratch_operands = 0 : i64, tpu.core_type = #tpu.core_type<tc>, window_params = [{transform_indices = @transform_0, window_bounds = array<i64: 1, 8, 32>}, {transform_indices = @transform_1, window_bounds = array<i64: 1, 8, 32>}, {transform_indices = @transform_2, window_bounds = array<i64: 1, 1, 8>}, {pipeline_mode = #tpu.pipeline_mode<synchronous>, transform_indices = @transform_3, window_bounds = array<i64: 32, 32>}, {pipeline_mode = #tpu.pipeline_mode<synchronous>, transform_indices = @transform_4, window_bounds = array<i64: 1, 32>}, {pipeline_mode = #tpu.pipeline_mode<synchronous>, transform_indices = @transform_5, window_bounds = array<i64: 32, 64>}, {pipeline_mode = #tpu.pipeline_mode<synchronous>, transform_indices = @transform_6, window_bounds = array<i64: 1, 64>}, {pipeline_mode = #tpu.pipeline_mode<synchronous>, transform_indices = @transform_7, window_bounds = array<i64: 32, 32>}, {pipeline_mode = #tpu.pipeline_mode<synchronous>, transform_indices = @transform_8, window_bounds = array<i64: 1, 32>}, {pipeline_mode = #tpu.pipeline_mode<synchronous>, transform_indices = @transform_9, window_bounds = array<i64: 1, 32>}, {pipeline_mode = #tpu.pipeline_mode<synchronous>, transform_indices = @transform_10, window_bounds = array<i64: 1, 32>}, {transform_indices = @transform_11, window_bounds = array<i64: 1, 8, 32>}]} {
    %c0 = arith.constant 0 : index
    %c0_0 = arith.constant 0 : index
    %c0_1 = arith.constant 0 : index
    %0 = vector.load %arg2[%c0, %c0_0, %c0_1] : memref<1x8x32xf32, #tpu.memory_space<vmem>>, vector<1x8x32xf32>
    %1 = vector.shape_cast %0 : vector<1x8x32xf32> to vector<8x32xf32>
    %c0_2 = arith.constant 0 : index
    %c0_3 = arith.constant 0 : index
    %c0_4 = arith.constant 0 : index
    %2 = vector.load %arg3[%c0_2, %c0_3, %c0_4] : memref<1x8x32xf32, #tpu.memory_space<vmem>>, vector<1x8x32xf32>
    %3 = vector.shape_cast %2 : vector<1x8x32xf32> to vector<8x32xf32>
    %c0_5 = arith.constant 0 : index
    %c0_6 = arith.constant 0 : index
    %c0_7 = arith.constant 0 : index
    %4 = vector.load %arg4[%c0_5, %c0_6, %c0_7] : memref<1x1x8xf32, #tpu.memory_space<vmem>>, vector<1x1x8xf32>
    %5 = vector.shape_cast %4 : vector<1x1x8xf32> to vector<1x8xf32>
    %6 = arith.truncf %1 : vector<8x32xf32> to vector<8x32xbf16>
    %c0_8 = arith.constant 0 : index
    %c0_9 = arith.constant 0 : index
    %7 = vector.load %arg5[%c0_8, %c0_9] : memref<32x32xbf16, #tpu.memory_space<vmem>>, vector<32x32xbf16>
    %cst = arith.constant dense<0.000000e+00> : vector<8x32xf32>
    %8 = tpu.matmul %6, %7, %cst {dimension_numbers = #tpu.dot_dimension_numbers<[1], [0], [0], [1], [0, 0, 1, 1], [], []>} : vector<8x32xbf16>, vector<32x32xbf16>, vector<8x32xf32> -> vector<8x32xf32>
    %c0_10 = arith.constant 0 : index
    %c0_11 = arith.constant 0 : index
    %9 = vector.load %arg6[%c0_10, %c0_11] : memref<1x32xf32, #tpu.memory_space<vmem>>, vector<1x32xf32>
    %10 = vector.broadcast %9 : vector<1x32xf32> to vector<8x32xf32>
    %11 = arith.addf %8, %10 : vector<8x32xf32>
    %12 = arith.truncf %3 : vector<8x32xf32> to vector<8x32xbf16>
    %c0_12 = arith.constant 0 : index
    %c0_13 = arith.constant 0 : index
    %13 = vector.load %arg7[%c0_12, %c0_13] : memref<32x64xbf16, #tpu.memory_space<vmem>>, vector<32x64xbf16>
    %cst_14 = arith.constant dense<0.000000e+00> : vector<8x64xf32>
    %14 = tpu.matmul %12, %13, %cst_14 {dimension_numbers = #tpu.dot_dimension_numbers<[1], [0], [0], [1], [0, 0, 1, 1], [], []>} : vector<8x32xbf16>, vector<32x64xbf16>, vector<8x64xf32> -> vector<8x64xf32>
    %c0_15 = arith.constant 0 : index
    %c0_16 = arith.constant 0 : index
    %15 = vector.load %arg8[%c0_15, %c0_16] : memref<1x64xf32, #tpu.memory_space<vmem>>, vector<1x64xf32>
    %16 = vector.broadcast %15 : vector<1x64xf32> to vector<8x64xf32>
    %17 = arith.addf %14, %16 : vector<8x64xf32>
    %18 = vector.extract_strided_slice %17 {offsets = [0, 0], sizes = [8, 32], strides = [1, 1]} : vector<8x64xf32> to vector<8x32xf32>
    %19 = vector.extract_strided_slice %17 {offsets = [0, 32], sizes = [8, 32], strides = [1, 1]} : vector<8x64xf32> to vector<8x32xf32>
    %20 = vector.shape_cast %5 : vector<1x8xf32> to vector<1x8xf32>
    %21 = vector.broadcast %20 : vector<1x8xf32> to vector<8x8xf32>
    %cst_17 = arith.constant 5.000000e-01 : f32
    %22 = vector.broadcast %cst_17 : f32 to vector<8x8xf32>
    %23 = arith.cmpf ogt, %21, %22 : vector<8x8xf32>
    %24 = vector.extract_strided_slice %11 {offsets = [0, 0], sizes = [8, 8], strides = [1, 1]} : vector<8x32xf32> to vector<8x8xf32>
    %25 = arith.truncf %24 : vector<8x8xf32> to vector<8x8xbf16>
    %26 = vector.extract_strided_slice %18 {offsets = [0, 0], sizes = [8, 8], strides = [1, 1]} : vector<8x32xf32> to vector<8x8xf32>
    %27 = arith.truncf %26 : vector<8x8xf32> to vector<8x8xbf16>
    %28 = vector.extract_strided_slice %19 {offsets = [0, 0], sizes = [8, 8], strides = [1, 1]} : vector<8x32xf32> to vector<8x8xf32>
    %29 = arith.truncf %28 : vector<8x8xf32> to vector<8x8xbf16>
    %cst_18 = arith.constant dense<0.000000e+00> : vector<8x8xf32>
    %30 = tpu.matmul %25, %27, %cst_18 {dimension_numbers = #tpu.dot_dimension_numbers<[1], [1], [0], [0], [0, 0, 1, 0], [], []>} : vector<8x8xbf16>, vector<8x8xbf16>, vector<8x8xf32> -> vector<8x8xf32>
    %cst_19 = arith.constant 0.353553385 : f32
    %31 = vector.broadcast %cst_19 : f32 to vector<8x8xf32>
    %32 = arith.mulf %30, %31 : vector<8x8xf32>
    %cst_20 = arith.constant -1.000000e+09 : f32
    %33 = vector.broadcast %cst_20 : f32 to vector<8x8xf32>
    %34 = arith.select %23, %33, %32 : vector<8x8xi1>, vector<8x8xf32>
    %cst_21 = arith.constant dense<0xFF800000> : vector<8xf32>
    %35 = vector.multi_reduction <maximumf>, %34, %cst_21 [1] : vector<8x8xf32> to vector<8xf32>
    %36 = vector.shape_cast %35 : vector<8xf32> to vector<8x1xf32>
    %37 = vector.broadcast %36 : vector<8x1xf32> to vector<8x8xf32>
    %38 = arith.subf %34, %37 : vector<8x8xf32>
    %39 = math.exp %38 : vector<8x8xf32>
    %cst_22 = arith.constant dense<0.000000e+00> : vector<8xf32>
    %40 = vector.multi_reduction <add>, %39, %cst_22 [1] : vector<8x8xf32> to vector<8xf32>
    %41 = vector.shape_cast %40 : vector<8xf32> to vector<8x1xf32>
    %42 = tpu.reciprocal %41 {approx = true} : vector<8x1xf32> -> vector<8x1xf32>
    %43 = vector.broadcast %42 : vector<8x1xf32> to vector<8x8xf32>
    %44 = arith.mulf %39, %43 : vector<8x8xf32>
    %45 = arith.truncf %44 : vector<8x8xf32> to vector<8x8xbf16>
    %cst_23 = arith.constant dense<0.000000e+00> : vector<8x8xf32>
    %46 = tpu.matmul %45, %29, %cst_23 {dimension_numbers = #tpu.dot_dimension_numbers<[1], [0], [0], [1], [0, 0, 1, 1], [], []>} : vector<8x8xbf16>, vector<8x8xbf16>, vector<8x8xf32> -> vector<8x8xf32>
    %47 = vector.extract_strided_slice %11 {offsets = [0, 8], sizes = [8, 8], strides = [1, 1]} : vector<8x32xf32> to vector<8x8xf32>
    %48 = arith.truncf %47 : vector<8x8xf32> to vector<8x8xbf16>
    %49 = vector.extract_strided_slice %18 {offsets = [0, 8], sizes = [8, 8], strides = [1, 1]} : vector<8x32xf32> to vector<8x8xf32>
    %50 = arith.truncf %49 : vector<8x8xf32> to vector<8x8xbf16>
    %51 = vector.extract_strided_slice %19 {offsets = [0, 8], sizes = [8, 8], strides = [1, 1]} : vector<8x32xf32> to vector<8x8xf32>
    %52 = arith.truncf %51 : vector<8x8xf32> to vector<8x8xbf16>
    %cst_24 = arith.constant dense<0.000000e+00> : vector<8x8xf32>
    %53 = tpu.matmul %48, %50, %cst_24 {dimension_numbers = #tpu.dot_dimension_numbers<[1], [1], [0], [0], [0, 0, 1, 0], [], []>} : vector<8x8xbf16>, vector<8x8xbf16>, vector<8x8xf32> -> vector<8x8xf32>
    %cst_25 = arith.constant 0.353553385 : f32
    %54 = vector.broadcast %cst_25 : f32 to vector<8x8xf32>
    %55 = arith.mulf %53, %54 : vector<8x8xf32>
    %cst_26 = arith.constant -1.000000e+09 : f32
    %56 = vector.broadcast %cst_26 : f32 to vector<8x8xf32>
    %57 = arith.select %23, %56, %55 : vector<8x8xi1>, vector<8x8xf32>
    %cst_27 = arith.constant dense<0xFF800000> : vector<8xf32>
    %58 = vector.multi_reduction <maximumf>, %57, %cst_27 [1] : vector<8x8xf32> to vector<8xf32>
    %59 = vector.shape_cast %58 : vector<8xf32> to vector<8x1xf32>
    %60 = vector.broadcast %59 : vector<8x1xf32> to vector<8x8xf32>
    %61 = arith.subf %57, %60 : vector<8x8xf32>
    %62 = math.exp %61 : vector<8x8xf32>
    %cst_28 = arith.constant dense<0.000000e+00> : vector<8xf32>
    %63 = vector.multi_reduction <add>, %62, %cst_28 [1] : vector<8x8xf32> to vector<8xf32>
    %64 = vector.shape_cast %63 : vector<8xf32> to vector<8x1xf32>
    %65 = tpu.reciprocal %64 {approx = true} : vector<8x1xf32> -> vector<8x1xf32>
    %66 = vector.broadcast %65 : vector<8x1xf32> to vector<8x8xf32>
    %67 = arith.mulf %62, %66 : vector<8x8xf32>
    %68 = arith.truncf %67 : vector<8x8xf32> to vector<8x8xbf16>
    %cst_29 = arith.constant dense<0.000000e+00> : vector<8x8xf32>
    %69 = tpu.matmul %68, %52, %cst_29 {dimension_numbers = #tpu.dot_dimension_numbers<[1], [0], [0], [1], [0, 0, 1, 1], [], []>} : vector<8x8xbf16>, vector<8x8xbf16>, vector<8x8xf32> -> vector<8x8xf32>
    %70 = vector.extract_strided_slice %11 {offsets = [0, 16], sizes = [8, 8], strides = [1, 1]} : vector<8x32xf32> to vector<8x8xf32>
    %71 = arith.truncf %70 : vector<8x8xf32> to vector<8x8xbf16>
    %72 = vector.extract_strided_slice %18 {offsets = [0, 16], sizes = [8, 8], strides = [1, 1]} : vector<8x32xf32> to vector<8x8xf32>
    %73 = arith.truncf %72 : vector<8x8xf32> to vector<8x8xbf16>
    %74 = vector.extract_strided_slice %19 {offsets = [0, 16], sizes = [8, 8], strides = [1, 1]} : vector<8x32xf32> to vector<8x8xf32>
    %75 = arith.truncf %74 : vector<8x8xf32> to vector<8x8xbf16>
    %cst_30 = arith.constant dense<0.000000e+00> : vector<8x8xf32>
    %76 = tpu.matmul %71, %73, %cst_30 {dimension_numbers = #tpu.dot_dimension_numbers<[1], [1], [0], [0], [0, 0, 1, 0], [], []>} : vector<8x8xbf16>, vector<8x8xbf16>, vector<8x8xf32> -> vector<8x8xf32>
    %cst_31 = arith.constant 0.353553385 : f32
    %77 = vector.broadcast %cst_31 : f32 to vector<8x8xf32>
    %78 = arith.mulf %76, %77 : vector<8x8xf32>
    %cst_32 = arith.constant -1.000000e+09 : f32
    %79 = vector.broadcast %cst_32 : f32 to vector<8x8xf32>
    %80 = arith.select %23, %79, %78 : vector<8x8xi1>, vector<8x8xf32>
    %cst_33 = arith.constant dense<0xFF800000> : vector<8xf32>
    %81 = vector.multi_reduction <maximumf>, %80, %cst_33 [1] : vector<8x8xf32> to vector<8xf32>
    %82 = vector.shape_cast %81 : vector<8xf32> to vector<8x1xf32>
    %83 = vector.broadcast %82 : vector<8x1xf32> to vector<8x8xf32>
    %84 = arith.subf %80, %83 : vector<8x8xf32>
    %85 = math.exp %84 : vector<8x8xf32>
    %cst_34 = arith.constant dense<0.000000e+00> : vector<8xf32>
    %86 = vector.multi_reduction <add>, %85, %cst_34 [1] : vector<8x8xf32> to vector<8xf32>
    %87 = vector.shape_cast %86 : vector<8xf32> to vector<8x1xf32>
    %88 = tpu.reciprocal %87 {approx = true} : vector<8x1xf32> -> vector<8x1xf32>
    %89 = vector.broadcast %88 : vector<8x1xf32> to vector<8x8xf32>
    %90 = arith.mulf %85, %89 : vector<8x8xf32>
    %91 = arith.truncf %90 : vector<8x8xf32> to vector<8x8xbf16>
    %cst_35 = arith.constant dense<0.000000e+00> : vector<8x8xf32>
    %92 = tpu.matmul %91, %75, %cst_35 {dimension_numbers = #tpu.dot_dimension_numbers<[1], [0], [0], [1], [0, 0, 1, 1], [], []>} : vector<8x8xbf16>, vector<8x8xbf16>, vector<8x8xf32> -> vector<8x8xf32>
    %93 = vector.extract_strided_slice %11 {offsets = [0, 24], sizes = [8, 8], strides = [1, 1]} : vector<8x32xf32> to vector<8x8xf32>
    %94 = arith.truncf %93 : vector<8x8xf32> to vector<8x8xbf16>
    %95 = vector.extract_strided_slice %18 {offsets = [0, 24], sizes = [8, 8], strides = [1, 1]} : vector<8x32xf32> to vector<8x8xf32>
    %96 = arith.truncf %95 : vector<8x8xf32> to vector<8x8xbf16>
    %97 = vector.extract_strided_slice %19 {offsets = [0, 24], sizes = [8, 8], strides = [1, 1]} : vector<8x32xf32> to vector<8x8xf32>
    %98 = arith.truncf %97 : vector<8x8xf32> to vector<8x8xbf16>
    %cst_36 = arith.constant dense<0.000000e+00> : vector<8x8xf32>
    %99 = tpu.matmul %94, %96, %cst_36 {dimension_numbers = #tpu.dot_dimension_numbers<[1], [1], [0], [0], [0, 0, 1, 0], [], []>} : vector<8x8xbf16>, vector<8x8xbf16>, vector<8x8xf32> -> vector<8x8xf32>
    %cst_37 = arith.constant 0.353553385 : f32
    %100 = vector.broadcast %cst_37 : f32 to vector<8x8xf32>
    %101 = arith.mulf %99, %100 : vector<8x8xf32>
    %cst_38 = arith.constant -1.000000e+09 : f32
    %102 = vector.broadcast %cst_38 : f32 to vector<8x8xf32>
    %103 = arith.select %23, %102, %101 : vector<8x8xi1>, vector<8x8xf32>
    %cst_39 = arith.constant dense<0xFF800000> : vector<8xf32>
    %104 = vector.multi_reduction <maximumf>, %103, %cst_39 [1] : vector<8x8xf32> to vector<8xf32>
    %105 = vector.shape_cast %104 : vector<8xf32> to vector<8x1xf32>
    %106 = vector.broadcast %105 : vector<8x1xf32> to vector<8x8xf32>
    %107 = arith.subf %103, %106 : vector<8x8xf32>
    %108 = math.exp %107 : vector<8x8xf32>
    %cst_40 = arith.constant dense<0.000000e+00> : vector<8xf32>
    %109 = vector.multi_reduction <add>, %108, %cst_40 [1] : vector<8x8xf32> to vector<8xf32>
    %110 = vector.shape_cast %109 : vector<8xf32> to vector<8x1xf32>
    %111 = tpu.reciprocal %110 {approx = true} : vector<8x1xf32> -> vector<8x1xf32>
    %112 = vector.broadcast %111 : vector<8x1xf32> to vector<8x8xf32>
    %113 = arith.mulf %108, %112 : vector<8x8xf32>
    %114 = arith.truncf %113 : vector<8x8xf32> to vector<8x8xbf16>
    %cst_41 = arith.constant dense<0.000000e+00> : vector<8x8xf32>
    %115 = tpu.matmul %114, %98, %cst_41 {dimension_numbers = #tpu.dot_dimension_numbers<[1], [0], [0], [1], [0, 0, 1, 1], [], []>} : vector<8x8xbf16>, vector<8x8xbf16>, vector<8x8xf32> -> vector<8x8xf32>
    %116 = tpu.concatenate %46, %69, %92, %115 in 1 : vector<8x8xf32>, vector<8x8xf32>, vector<8x8xf32>, vector<8x8xf32> -> vector<8x32xf32>
    %117 = arith.truncf %116 : vector<8x32xf32> to vector<8x32xbf16>
    %c0_42 = arith.constant 0 : index
    %c0_43 = arith.constant 0 : index
    %118 = vector.load %arg9[%c0_42, %c0_43] : memref<32x32xbf16, #tpu.memory_space<vmem>>, vector<32x32xbf16>
    %cst_44 = arith.constant dense<0.000000e+00> : vector<8x32xf32>
    %119 = tpu.matmul %117, %118, %cst_44 {dimension_numbers = #tpu.dot_dimension_numbers<[1], [0], [0], [1], [0, 0, 1, 1], [], []>} : vector<8x32xbf16>, vector<32x32xbf16>, vector<8x32xf32> -> vector<8x32xf32>
    %c0_45 = arith.constant 0 : index
    %c0_46 = arith.constant 0 : index
    %120 = vector.load %arg10[%c0_45, %c0_46] : memref<1x32xf32, #tpu.memory_space<vmem>>, vector<1x32xf32>
    %121 = vector.broadcast %120 : vector<1x32xf32> to vector<8x32xf32>
    %122 = arith.addf %119, %121 : vector<8x32xf32>
    %123 = arith.addf %1, %122 : vector<8x32xf32>
    %cst_47 = arith.constant dense<0.000000e+00> : vector<8xf32>
    %124 = vector.multi_reduction <add>, %123, %cst_47 [1] : vector<8x32xf32> to vector<8xf32>
    %125 = vector.shape_cast %124 : vector<8xf32> to vector<8x1xf32>
    %cst_48 = arith.constant 3.200000e+01 : f32
    %126 = vector.broadcast %cst_48 : f32 to vector<8x1xf32>
    %127 = arith.divf %125, %126 : vector<8x1xf32>
    %128 = vector.broadcast %127 : vector<8x1xf32> to vector<8x32xf32>
    %129 = arith.subf %123, %128 : vector<8x32xf32>
    %130 = arith.mulf %129, %129 : vector<8x32xf32>
    %cst_49 = arith.constant dense<0.000000e+00> : vector<8xf32>
    %131 = vector.multi_reduction <add>, %130, %cst_49 [1] : vector<8x32xf32> to vector<8xf32>
    %132 = vector.shape_cast %131 : vector<8xf32> to vector<8x1xf32>
    %cst_50 = arith.constant 3.200000e+01 : f32
    %133 = vector.broadcast %cst_50 : f32 to vector<8x1xf32>
    %134 = arith.divf %132, %133 : vector<8x1xf32>
    %135 = vector.broadcast %127 : vector<8x1xf32> to vector<8x32xf32>
    %136 = arith.subf %123, %135 : vector<8x32xf32>
    %cst_51 = arith.constant 9.99999974E-6 : f32
    %137 = vector.broadcast %cst_51 : f32 to vector<8x1xf32>
    %138 = arith.addf %134, %137 : vector<8x1xf32>
    %139 = math.rsqrt %138 : vector<8x1xf32>
    %140 = vector.broadcast %139 : vector<8x1xf32> to vector<8x32xf32>
    %141 = arith.mulf %136, %140 : vector<8x32xf32>
    %c0_52 = arith.constant 0 : index
    %c0_53 = arith.constant 0 : index
    %142 = vector.load %arg11[%c0_52, %c0_53] : memref<1x32xf32, #tpu.memory_space<vmem>>, vector<1x32xf32>
    %143 = vector.broadcast %142 : vector<1x32xf32> to vector<8x32xf32>
    %144 = arith.mulf %143, %141 : vector<8x32xf32>
    %c0_54 = arith.constant 0 : index
    %c0_55 = arith.constant 0 : index
    %145 = vector.load %arg12[%c0_54, %c0_55] : memref<1x32xf32, #tpu.memory_space<vmem>>, vector<1x32xf32>
    %146 = vector.broadcast %145 : vector<1x32xf32> to vector<8x32xf32>
    %147 = arith.addf %144, %146 : vector<8x32xf32>
    %c0_56 = arith.constant 0 : index
    %c0_57 = arith.constant 0 : index
    %c0_58 = arith.constant 0 : index
    %148 = vector.load %arg13[%c0_56, %c0_57, %c0_58] : memref<1x8x32xf32, #tpu.memory_space<vmem>>, vector<1x8x32xf32>
    %149 = vector.shape_cast %148 : vector<1x8x32xf32> to vector<8x32xf32>
    %150 = vector.shape_cast %147 : vector<8x32xf32> to vector<1x8x32xf32>
    tpu.vector_store %arg13[%c0_56, %c0_57, %c0_58], %150 {strides = array<i32>} : memref<1x8x32xf32, #tpu.memory_space<vmem>>, vector<1x8x32xf32>,
    return
  }
  func.func @transform_0(%arg0: i32, %arg1: i32) -> (i32, i32, i32) {
    %c0_i32 = arith.constant 0 : i32
    %c0_i32_0 = arith.constant 0 : i32
    return %arg0, %arg1, %c0_i32 : i32, i32, i32
  }
  func.func @transform_1(%arg0: i32, %arg1: i32) -> (i32, i32, i32) {
    %c0_i32 = arith.constant 0 : i32
    %c0_i32_0 = arith.constant 0 : i32
    %c0_i32_1 = arith.constant 0 : i32
    return %arg0, %c0_i32, %c0_i32_0 : i32, i32, i32
  }
  func.func @transform_2(%arg0: i32, %arg1: i32) -> (i32, i32, i32) {
    %c0_i32 = arith.constant 0 : i32
    %c0_i32_0 = arith.constant 0 : i32
    %c0_i32_1 = arith.constant 0 : i32
    return %arg0, %c0_i32, %c0_i32_0 : i32, i32, i32
  }
  func.func @transform_3(%arg0: i32, %arg1: i32) -> (i32, i32) {
    %c0_i32 = arith.constant 0 : i32
    %c0_i32_0 = arith.constant 0 : i32
    %c0_i32_1 = arith.constant 0 : i32
    return %c0_i32, %c0_i32_0 : i32, i32
  }
  func.func @transform_4(%arg0: i32, %arg1: i32) -> (i32, i32) {
    %c0_i32 = arith.constant 0 : i32
    %c0_i32_0 = arith.constant 0 : i32
    %c0_i32_1 = arith.constant 0 : i32
    return %c0_i32, %c0_i32_0 : i32, i32
  }
  func.func @transform_5(%arg0: i32, %arg1: i32) -> (i32, i32) {
    %c0_i32 = arith.constant 0 : i32
    %c0_i32_0 = arith.constant 0 : i32
    %c0_i32_1 = arith.constant 0 : i32
    return %c0_i32, %c0_i32_0 : i32, i32
  }
  func.func @transform_6(%arg0: i32, %arg1: i32) -> (i32, i32) {
    %c0_i32 = arith.constant 0 : i32
    %c0_i32_0 = arith.constant 0 : i32
    %c0_i32_1 = arith.constant 0 : i32
    return %c0_i32, %c0_i32_0 : i32, i32
  }
  func.func @transform_7(%arg0: i32, %arg1: i32) -> (i32, i32) {
    %c0_i32 = arith.constant 0 : i32
    %c0_i32_0 = arith.constant 0 : i32
    %c0_i32_1 = arith.constant 0 : i32
    return %c0_i32, %c0_i32_0 : i32, i32
  }
  func.func @transform_8(%arg0: i32, %arg1: i32) -> (i32, i32) {
    %c0_i32 = arith.constant 0 : i32
    %c0_i32_0 = arith.constant 0 : i32
    %c0_i32_1 = arith.constant 0 : i32
    return %c0_i32, %c0_i32_0 : i32, i32
  }
  func.func @transform_9(%arg0: i32, %arg1: i32) -> (i32, i32) {
    %c0_i32 = arith.constant 0 : i32
    %c0_i32_0 = arith.constant 0 : i32
    %c0_i32_1 = arith.constant 0 : i32
    return %c0_i32, %c0_i32_0 : i32, i32
  }
  func.func @transform_10(%arg0: i32, %arg1: i32) -> (i32, i32) {
    %c0_i32 = arith.constant 0 : i32
    %c0_i32_0 = arith.constant 0 : i32
    %c0_i32_1 = arith.constant 0 : i32
    return %c0_i32, %c0_i32_0 : i32, i32
  }
  func.func @transform_11(%arg0: i32, %arg1: i32) -> (i32, i32, i32) {
    %c0_i32 = arith.constant 0 : i32
    %c0_i32_0 = arith.constant 0 : i32
    return %arg0, %arg1, %c0_i32 : i32, i32, i32
  }
}

module attributes {stable_mosaic.version = 11 : i64} {
  func.func @_ffn_kernel(%arg0: i32, %arg1: i32, %arg2: memref<16x32xf32, #tpu.memory_space<vmem>>, %arg3: memref<32x64xbf16, #tpu.memory_space<vmem>>, %arg4: memref<1x64xf32, #tpu.memory_space<vmem>>, %arg5: memref<64x32xbf16, #tpu.memory_space<vmem>>, %arg6: memref<1x32xf32, #tpu.memory_space<vmem>>, %arg7: memref<1x32xf32, #tpu.memory_space<vmem>>, %arg8: memref<1x32xf32, #tpu.memory_space<vmem>>, %arg9: memref<16x32xf32, #tpu.memory_space<vmem>>, %arg10: memref<16x32xf32, #tpu.memory_space<vmem>>) attributes {dimension_semantics = [#tpu.dimension_semantics<parallel>, #tpu.dimension_semantics<arbitrary>], iteration_bounds = array<i64: 1, 1>, scalar_prefetch = 0 : i64, scratch_operands = 1 : i64, tpu.core_type = #tpu.core_type<tc>, window_params = [{transform_indices = @transform_0, window_bounds = array<i64: 16, 32>}, {transform_indices = @transform_1, window_bounds = array<i64: 32, 64>}, {transform_indices = @transform_2, window_bounds = array<i64: 1, 64>}, {transform_indices = @transform_3, window_bounds = array<i64: 64, 32>}, {pipeline_mode = #tpu.pipeline_mode<synchronous>, transform_indices = @transform_4, window_bounds = array<i64: 1, 32>}, {pipeline_mode = #tpu.pipeline_mode<synchronous>, transform_indices = @transform_5, window_bounds = array<i64: 1, 32>}, {pipeline_mode = #tpu.pipeline_mode<synchronous>, transform_indices = @transform_6, window_bounds = array<i64: 1, 32>}, {transform_indices = @transform_7, window_bounds = array<i64: 16, 32>}]} {
    %c0_i32 = arith.constant 0 : i32
    %0 = arith.cmpi eq, %arg1, %c0_i32 : i32
    %1 = arith.extui %0 : i1 to i32
    %c0_i32_0 = arith.constant 0 : i32
    %2 = arith.cmpi ne, %1, %c0_i32_0 : i32
    scf.if %2 {
      %cst_16 = arith.constant 0.000000e+00 : f32
      %21 = vector.broadcast %cst_16 : f32 to vector<16x32xf32>
      %c0_17 = arith.constant 0 : index
      %c0_18 = arith.constant 0 : index
      %22 = vector.load %arg10[%c0_17, %c0_18] : memref<16x32xf32, #tpu.memory_space<vmem>>, vector<16x32xf32>
      tpu.vector_store %arg10[%c0_17, %c0_18], %21 {strides = array<i32>} : memref<16x32xf32, #tpu.memory_space<vmem>>, vector<16x32xf32>,
    } else {
    }
    %c0 = arith.constant 0 : index
    %c0_1 = arith.constant 0 : index
    %3 = vector.load %arg2[%c0, %c0_1] : memref<16x32xf32, #tpu.memory_space<vmem>>, vector<16x32xf32>
    %4 = arith.truncf %3 : vector<16x32xf32> to vector<16x32xbf16>
    %c0_2 = arith.constant 0 : index
    %c0_3 = arith.constant 0 : index
    %5 = vector.load %arg3[%c0_2, %c0_3] : memref<32x64xbf16, #tpu.memory_space<vmem>>, vector<32x64xbf16>
    %cst = arith.constant dense<0.000000e+00> : vector<16x64xf32>
    %6 = tpu.matmul %4, %5, %cst {dimension_numbers = #tpu.dot_dimension_numbers<[1], [0], [0], [1], [0, 0, 1, 1], [], []>} : vector<16x32xbf16>, vector<32x64xbf16>, vector<16x64xf32> -> vector<16x64xf32>
    %c0_4 = arith.constant 0 : index
    %c0_5 = arith.constant 0 : index
    %7 = vector.load %arg4[%c0_4, %c0_5] : memref<1x64xf32, #tpu.memory_space<vmem>>, vector<1x64xf32>
    %8 = vector.broadcast %7 : vector<1x64xf32> to vector<16x64xf32>
    %9 = arith.addf %6, %8 : vector<16x64xf32>
    %cst_6 = arith.constant 0.000000e+00 : f32
    %10 = vector.broadcast %cst_6 : f32 to vector<16x64xf32>
    %11 = arith.maximumf %9, %10 : vector<16x64xf32>
    %c0_7 = arith.constant 0 : index
    %c0_8 = arith.constant 0 : index
    %12 = vector.load %arg10[%c0_7, %c0_8] : memref<16x32xf32, #tpu.memory_space<vmem>>, vector<16x32xf32>
    %13 = arith.truncf %11 : vector<16x64xf32> to vector<16x64xbf16>
    %c0_9 = arith.constant 0 : index
    %c0_10 = arith.constant 0 : index
    %14 = vector.load %arg5[%c0_9, %c0_10] : memref<64x32xbf16, #tpu.memory_space<vmem>>, vector<64x32xbf16>
    %cst_11 = arith.constant dense<0.000000e+00> : vector<16x32xf32>
    %15 = tpu.matmul %13, %14, %cst_11 {dimension_numbers = #tpu.dot_dimension_numbers<[1], [0], [0], [1], [0, 0, 1, 1], [], []>} : vector<16x64xbf16>, vector<64x32xbf16>, vector<16x32xf32> -> vector<16x32xf32>
    %16 = arith.addf %12, %15 : vector<16x32xf32>
    %c0_12 = arith.constant 0 : index
    %c0_13 = arith.constant 0 : index
    %17 = vector.load %arg10[%c0_12, %c0_13] : memref<16x32xf32, #tpu.memory_space<vmem>>, vector<16x32xf32>
    tpu.vector_store %arg10[%c0_12, %c0_13], %16 {strides = array<i32>} : memref<16x32xf32, #tpu.memory_space<vmem>>, vector<16x32xf32>,
    %c0_i32_14 = arith.constant 0 : i32
    %18 = arith.cmpi eq, %arg1, %c0_i32_14 : i32
    %19 = arith.extui %18 : i1 to i32
    %c0_i32_15 = arith.constant 0 : i32
    %20 = arith.cmpi ne, %19, %c0_i32_15 : i32
    scf.if %20 {
      %c0_16 = arith.constant 0 : index
      %c0_17 = arith.constant 0 : index
      %21 = vector.load %arg10[%c0_16, %c0_17] : memref<16x32xf32, #tpu.memory_space<vmem>>, vector<16x32xf32>
      %22 = arith.addf %3, %21 : vector<16x32xf32>
      %c0_18 = arith.constant 0 : index
      %c0_19 = arith.constant 0 : index
      %23 = vector.load %arg6[%c0_18, %c0_19] : memref<1x32xf32, #tpu.memory_space<vmem>>, vector<1x32xf32>
      %24 = vector.broadcast %23 : vector<1x32xf32> to vector<16x32xf32>
      %25 = arith.addf %22, %24 : vector<16x32xf32>
      %cst_20 = arith.constant dense<0.000000e+00> : vector<16xf32>
      %26 = vector.multi_reduction <add>, %25, %cst_20 [1] : vector<16x32xf32> to vector<16xf32>
      %27 = vector.shape_cast %26 : vector<16xf32> to vector<16x1xf32>
      %cst_21 = arith.constant 3.200000e+01 : f32
      %28 = vector.broadcast %cst_21 : f32 to vector<16x1xf32>
      %29 = arith.divf %27, %28 : vector<16x1xf32>
      %30 = vector.broadcast %29 : vector<16x1xf32> to vector<16x32xf32>
      %31 = arith.subf %25, %30 : vector<16x32xf32>
      %32 = arith.mulf %31, %31 : vector<16x32xf32>
      %cst_22 = arith.constant dense<0.000000e+00> : vector<16xf32>
      %33 = vector.multi_reduction <add>, %32, %cst_22 [1] : vector<16x32xf32> to vector<16xf32>
      %34 = vector.shape_cast %33 : vector<16xf32> to vector<16x1xf32>
      %cst_23 = arith.constant 3.200000e+01 : f32
      %35 = vector.broadcast %cst_23 : f32 to vector<16x1xf32>
      %36 = arith.divf %34, %35 : vector<16x1xf32>
      %c0_24 = arith.constant 0 : index
      %c0_25 = arith.constant 0 : index
      %37 = vector.load %arg7[%c0_24, %c0_25] : memref<1x32xf32, #tpu.memory_space<vmem>>, vector<1x32xf32>
      %38 = vector.broadcast %29 : vector<16x1xf32> to vector<16x32xf32>
      %39 = arith.subf %25, %38 : vector<16x32xf32>
      %cst_26 = arith.constant 9.99999974E-6 : f32
      %40 = vector.broadcast %cst_26 : f32 to vector<16x1xf32>
      %41 = arith.addf %36, %40 : vector<16x1xf32>
      %42 = math.rsqrt %41 : vector<16x1xf32>
      %43 = vector.broadcast %42 : vector<16x1xf32> to vector<16x32xf32>
      %44 = arith.mulf %39, %43 : vector<16x32xf32>
      %45 = vector.broadcast %37 : vector<1x32xf32> to vector<16x32xf32>
      %46 = arith.mulf %45, %44 : vector<16x32xf32>
      %c0_27 = arith.constant 0 : index
      %c0_28 = arith.constant 0 : index
      %47 = vector.load %arg8[%c0_27, %c0_28] : memref<1x32xf32, #tpu.memory_space<vmem>>, vector<1x32xf32>
      %48 = vector.broadcast %47 : vector<1x32xf32> to vector<16x32xf32>
      %49 = arith.addf %46, %48 : vector<16x32xf32>
      %c0_29 = arith.constant 0 : index
      %c0_30 = arith.constant 0 : index
      %50 = vector.load %arg9[%c0_29, %c0_30] : memref<16x32xf32, #tpu.memory_space<vmem>>, vector<16x32xf32>
      tpu.vector_store %arg9[%c0_29, %c0_30], %49 {strides = array<i32>} : memref<16x32xf32, #tpu.memory_space<vmem>>, vector<16x32xf32>,
    } else {
    }
    return
  }
  func.func @transform_0(%arg0: i32, %arg1: i32) -> (i32, i32) {
    %c0_i32 = arith.constant 0 : i32
    %c0_i32_0 = arith.constant 0 : i32
    return %arg0, %c0_i32 : i32, i32
  }
  func.func @transform_1(%arg0: i32, %arg1: i32) -> (i32, i32) {
    %c0_i32 = arith.constant 0 : i32
    %c0_i32_0 = arith.constant 0 : i32
    return %c0_i32, %arg1 : i32, i32
  }
  func.func @transform_2(%arg0: i32, %arg1: i32) -> (i32, i32) {
    %c0_i32 = arith.constant 0 : i32
    %c0_i32_0 = arith.constant 0 : i32
    return %c0_i32, %arg1 : i32, i32
  }
  func.func @transform_3(%arg0: i32, %arg1: i32) -> (i32, i32) {
    %c0_i32 = arith.constant 0 : i32
    %c0_i32_0 = arith.constant 0 : i32
    return %arg1, %c0_i32 : i32, i32
  }
  func.func @transform_4(%arg0: i32, %arg1: i32) -> (i32, i32) {
    %c0_i32 = arith.constant 0 : i32
    %c0_i32_0 = arith.constant 0 : i32
    %c0_i32_1 = arith.constant 0 : i32
    return %c0_i32, %c0_i32_0 : i32, i32
  }
  func.func @transform_5(%arg0: i32, %arg1: i32) -> (i32, i32) {
    %c0_i32 = arith.constant 0 : i32
    %c0_i32_0 = arith.constant 0 : i32
    %c0_i32_1 = arith.constant 0 : i32
    return %c0_i32, %c0_i32_0 : i32, i32
  }
  func.func @transform_6(%arg0: i32, %arg1: i32) -> (i32, i32) {
    %c0_i32 = arith.constant 0 : i32
    %c0_i32_0 = arith.constant 0 : i32
    %c0_i32_1 = arith.constant 0 : i32
    return %c0_i32, %c0_i32_0 : i32, i32
  }
  func.func @transform_7(%arg0: i32, %arg1: i32) -> (i32, i32) {
    %c0_i32 = arith.constant 0 : i32
    %c0_i32_0 = arith.constant 0 : i32
    return %arg0, %c0_i32 : i32, i32
  }
}

</mosaic_0001>

<bundles_post_ra>
// kernel: _decoder_forward.11
= control target key start
LH: loop header
LB: loop body
LE: loop exit
PB: predicated region body
PF: predicated region fallthrough
CT: control target
= control target key end

     0   :  { %v350_v1 = vmov 0.0   ;;  %vm351_vm0 = vmmov 0   ;;  %vm32_vm1 = vcmask 261120   ;;  %s454_s0 = inlined_call_operand.vmem [shape: f32[16,32], index: 0, kind: input, shape index: {}]   ;;  %s455_s1 = inlined_call_operand.vmem [shape: bf16[32,64], index: 1, kind: input, shape index: {}]   ;;  %s456_s2 = inlined_call_operand.vmem [shape: f32[1,64], index: 2, kind: input, shape index: {}]   ;;  %s457_s3 = inlined_call_operand.vmem [shape: bf16[64,32], index: 3, kind: input, shape index: {}]   ;;  %s458_s4 = inlined_call_operand.vmem [shape: f32[1,32], index: 4, kind: input, shape index: {}]   ;;  %s459_s5 = inlined_call_operand.vmem [shape: f32[1,32], index: 5, kind: input, shape index: {}]   ;;  %s460_s6 = inlined_call_operand.vmem [shape: f32[1,32], index: 6, kind: input, shape index: {}]   ;;  %s461_s7 = inlined_call_operand.hbm [shape: f32[16,32], index: 7, kind: output, shape index: {}]  }
   0x1   :  { %v316_v0 = vld [vmem:[%s455_s1] sm:$0xff]   ;;  %291 = vmatprep.subr.bf16.mxu0 %v350_v1  ;;  %v317_v2 = vld [vmem:[%s455_s1 + $0x8] sm:$0xff]   ;;  %299 = vmatprep.subr.bf16.mxu1 %v350_v1  ;;  %33 = vst.msk [vmem:[#allocation2] sm:$0xff] %vm32_vm1, %v350_v1  ;;  %34 = vst.msk [vmem:[#allocation2 + $0x8] sm:$0xff] %vm32_vm1, %v350_v1 }
   0x2   :  { %292 = vmatpush3.bf16.msra.mxu0 %v316_v0  ;;  %295 = vmatprep.mubr.msk.bf16.mxu0 %vm351_vm0, %v350_v1  ;;  %v35_v3 = vld [vmem:[%s454_s0] sm:$0xff]  ;;  %v36_v4 = vld [vmem:[%s454_s0 + $0x8] sm:$0xff] }
   0x3   :  { %293 = vmatprep.subr.bf16.mxu0 %v350_v1  ;;  %v318_v5 = vld [vmem:[%s457_s3] sm:$0xff]   ;;  %307 = vmatprep.mubr.msk.bf16.mxu1 %vm351_vm0, %v350_v1  ;;  %v319_v6 = vld [vmem:[%s457_s3 + $0x8] sm:$0xff]   ;;  %v37_v7 = vpack.c.bf16 %v36_v4, %v35_v3 }
   0x4   :  { %300 = vmatpush3.bf16.msra.mxu1 %v318_v5 }
   0x5   :  { %301 = vmatprep.subr.bf16.mxu1 %v350_v1 }
   0x6   :  { %294 = vmatpush3.bf16.msra.mxu0 %v317_v2 }
   0x7   :  { %12 = vsyncpa [#allocation4], 0  ;;  %v320_v8 = vld [vmem:[%s457_s3 + $0x10] sm:$0xff]   ;;  %v321_v9 = vld [vmem:[%s457_s3 + $0x18] sm:$0xff]   ;;  %vm143_vm2 = vcmask 523264   ;;  %s352_s20 = smov [#allocation3]  }
   0x8   :  { %302 = vmatpush3.bf16.msra.mxu1 %v319_v6  ;;  %v271_v10 = vld [vmem:[%s456_s2] ss:$0 sm:$0xff]  ;;  %v109_v22 = vld [vmem:[#allocation2 + $0x8] sm:$0xff]  ;;  %s260_s21 = sshll.u32 %s352_s20, 4  ;;  %s261_s21 = int_to_ptr.vmem [resolvable:$true] %s260_s21 }
   0x9   :  { %296 = vmatmul.mubr.msk.bf16.vlgmr.msra.gmra.mrb[0].mxu0 %vm32_vm1, %v37_v7  ;;  %303 = vmatprep.subr.bf16.mxu1 %v350_v1  ;;  %v108_v20 = vld [vmem:[#allocation2] sm:$0xff]  ;;  %s326_s22 = scalar_lea.vmem %s261_s21, 256  ;;  %p331_p1 = scmp.lt.s32.totalorder %s261_s21, %s261_s21 }
   0xa   :  { %v280_v29 = vld [vmem:[%s458_s4] ss:$0 sm:$0xff]  ;;  %p327_p0 = scmp.ne.s32.totalorder %s261_s21, %s326_s22  ;;  %p332_p2 = scmp.lt.s32.totalorder %s326_s22, %s326_s22 }
   0xb   :  { %v281_v54 = vld [vmem:[%s459_s5] ss:$0 sm:$0xff] }
   0xc   :  { %304 = vmatpush3.bf16.msra.mxu1 %v320_v8  ;;  %v282_v56 = vld [vmem:[%s460_s6] ss:$0 sm:$0xff]  ;;  %p333_p3 = por %p332_p2, %p331_p1 }
   0xd   :  { %305 = vmatprep.subr.bf16.mxu1 %v350_v1 }
   0xe   :  { %p334_p4 = pnand %p333_p3, %p327_p0 }
  0x10   :  { %306 = vmatpush3.bf16.msra.mxu1 %v321_v9 }
  0xdc   :  { %v99_v11 = vpop.f32.mrb[0].mxu0 }
  0xdd   :  { %v100_v12 = vadd.f32 %v271_v10, %v99_v11  ;;  %v297_v13 = vpop.f32.mrb[1].mxu0 }
  0xde   :  { %v102_v14 = vpop.f32.mrb[2].mxu0 }
  0xdf   :  { %v103_v15 = vadd.f32 %v271_v10, %v102_v14  ;;  %v298_v16 = vpop.f32.mrb[3].mxu0  ;;  %v106_v17 = vmax.f32 %v100_v12, 0.0 }
  0xe1   :  { %v107_v18 = vmax.f32 %v103_v15, 0.0 }
  0xe3   :  { %v110_v19 = vpack.c.bf16 %v107_v18, %v106_v17 }
  0xe5   :  { %308 = vmatmul.mubr.msk.bf16.vlgmr.msra.gmra.mrb[0].mxu1 %vm143_vm2, %v110_v19 }
 0x1b8   :  { %v181_v21 = vpop.f32.mrb[0].mxu1 }
 0x1b9   :  { %v188_v23 = vadd.f32 %v181_v21, %v108_v20  ;;  %v309_v24 = vpop.f32.mrb[1].mxu1 }
 0x1ba   :  { %v184_v25 = vpop.f32.mrb[2].mxu1 }
 0x1bb   :  { %190 = vst.msk [vmem:[#allocation2] sm:$0xff] %vm32_vm1, %v188_v23  ;;  %v189_v26 = vadd.f32 %v184_v25, %v109_v22  ;;  %v310_v27 = vpop.f32.mrb[3].mxu1 }
 0x1bd   :  { %191 = vst.msk [vmem:[#allocation2 + $0x8] sm:$0xff] %vm32_vm1, %v189_v26 }
 0x1c2   :  { %v195_v28 = vld [vmem:[#allocation2] sm:$0xff] }
 0x1c3   :  { %v197_v30 = vadd.f32 %v195_v28, %v35_v3 }
 0x1c4   :  { %v196_v31 = vld [vmem:[#allocation2 + $0x8] sm:$0xff] }
 0x1c5   :  { %v206_v32 = vadd.f32 %v280_v29, %v197_v30  ;;  %v198_v33 = vadd.f32 %v196_v31, %v36_v4 }
 0x1c7   :  { %v208_v34 = vsel %vm32_vm1, %v206_v32, 0.0  ;;  %v207_v35 = vadd.f32 %v280_v29, %v198_v33 }
 0x1c8   :  { %209 = vadd.xlane.f32.xlu0 %v208_v34 }
 0x1c9   :  { %v211_v36 = vsel %vm32_vm1, %v207_v35, 0.0 }
 0x1cc   :  { %212 = vadd.xlane.f32.xlu0 %v211_v36 }
 0x255   :  { %v210_v37 = vpop.xlane.xlu0 %209 }
 0x256   :  { %v215_v38 = vmul.f32 0.03125, %v210_v37 }
 0x258   :  { %v217_v39 = vsub.f32 %v206_v32, %v215_v38 }
 0x259   :  { %v213_v40 = vpop.xlane.xlu0 %212 }
 0x25a   :  { %v216_v41 = vmul.f32 0.03125, %v213_v40  ;;  %v219_v42 = vmul.f32 %v217_v39, %v217_v39 }
 0x25c   :  { %v218_v43 = vsub.f32 %v207_v35, %v216_v41  ;;  %v221_v44 = vsel %vm32_vm1, %v219_v42, 0.0 }
 0x25d   :  { %222 = vadd.xlane.f32.xlu1 %v221_v44 }
 0x25e   :  { %v220_v45 = vmul.f32 %v218_v43, %v218_v43 }
 0x260   :  { %v224_v46 = vsel %vm32_vm1, %v220_v45, 0.0 }
 0x261   :  { %225 = vadd.xlane.f32.xlu1 %v224_v46 }
 0x2ea   :  { %v223_v47 = vpop.xlane.xlu1 %222 }
 0x2eb   :  { %v227_v48 = vmul.f32 0.03125, %v223_v47 }
 0x2ed   :  { %v230_v49 = vadd.f32 1e-05, %v227_v48 }
 0x2ee   :  { %v226_v50 = vpop.xlane.xlu1 %225 }
 0x2ef   :  { %322 = vrsqrt.f32 %v230_v49  ;;  %v228_v51 = vmul.f32 0.03125, %v226_v50 }
 0x2f1   :  { %v231_v52 = vadd.f32 1e-05, %v228_v51 }
 0x2f3   :  { %324 = vrsqrt.f32 %v231_v52 }
 0x2f9   :  { %v323_v53 = vpop.eup %322 }
 0x2fa   :  { %v234_v55 = vmul.f32 %v323_v53, %v217_v39 }
 0x2fc   :  { %v242_v57 = vmul.f32 %v281_v54, %v234_v55 }
 0x2fd   :  { %v325_v58 = vpop.eup %324 }
 0x2fe   :  { %v235_v59 = vmul.f32 %v325_v58, %v218_v43  ;;  %v251_v60 = vadd.f32 %v282_v56, %v242_v57 }
 0x300   :  { %v243_v61 = vmul.f32 %v281_v54, %v235_v59  ;;  %253 = vst.msk [vmem:[#allocation3] sm:$0xff] %vm32_vm1, %v251_v60 }
 0x302   :  { %v252_v62 = vadd.f32 %v282_v56, %v243_v61 }
 0x304   :  { %254 = vst.msk [vmem:[#allocation3 + $0x8] sm:$0xff] %vm32_vm1, %v252_v62 }
 0x305   :  { %337 = shalt.err (!%p334_p4)
}
 0x306   :  { %s338_s23 = scalar_lea.hbm %s461_s7, 256 }
 0x307   :  { %p339_p5 = scmp.ne.s32.totalorder %s461_s7, %s338_s23  ;;  %p342_p6 = scmp.lt.u32.totalorder %s338_s23, %s461_s7 }
 0x309   :  { %p344_p7 = pnand %p342_p6, %p339_p5 }
 0x30b   :  { %347 = shalt.err (!%p344_p7)
}
 0x30c   :  { %s353_s28 = smov 128   ;;  %s354_s29 = smov 8  }
 0x30d   :  { %266 = dma.vmem_to_hbm [thread:$0]  %s261_s21, 256, %s461_s7, [#allocation4], %s353_s28, %s353_s28, %s354_s29  }
 0x30e   :  { %348 = dma.done.wait [#allocation4], 256  }
 0x30f   :  { %349 = vsyncadd [#allocation4], 4294967040 }
 0x310   :  { %270 = vsyncpa [#allocation4], 1 }

// kernel: _decoder_forward.8
= control target key start
LH: loop header
LB: loop body
LE: loop exit
PB: predicated region body
PF: predicated region fallthrough
CT: control target
= control target key end

     0   :  { %vm31_vm0 = vcmask 261120   ;;  %v310_v0 = vmov 0.0   ;;  %vm311_vm1 = vmmov 0   ;;  %vm142_vm2 = vcmask 523264   ;;  %s405_s1 = inlined_call_operand.vmem [shape: bf16[32,64], index: 1, kind: input, shape index: {}]   ;;  %s406_s0 = inlined_call_operand.vmem [shape: f32[16,32], index: 0, kind: input, shape index: {}]   ;;  %s407_s3 = inlined_call_operand.vmem [shape: bf16[64,32], index: 3, kind: input, shape index: {}]   ;;  %s408_s2 = inlined_call_operand.vmem [shape: f32[1,64], index: 2, kind: input, shape index: {}]   ;;  %s409_s4 = inlined_call_operand.vmem [shape: f32[1,32], index: 4, kind: input, shape index: {}]   ;;  %s410_s5 = inlined_call_operand.vmem [shape: f32[1,32], index: 5, kind: input, shape index: {}]   ;;  %s411_s6 = inlined_call_operand.vmem [shape: f32[1,32], index: 6, kind: input, shape index: {}]   ;;  %s412_s7 = inlined_call_operand.vmem [shape: f32[16,32], index: 7, kind: output, shape index: {}]  }
   0x1   :  { %278 = vmatprep.subr.bf16.mxu0 %v310_v0  ;;  %v300_v1 = vld [vmem:[%s405_s1] sm:$0xff]   ;;  %282 = vmatprep.mubr.msk.bf16.mxu0 %vm311_vm1, %v310_v0  ;;  %32 = vst.msk [vmem:[#allocation2] sm:$0xff] %vm31_vm0, %v310_v0  ;;  %33 = vst.msk [vmem:[#allocation2 + $0x8] sm:$0xff] %vm31_vm0, %v310_v0  ;;  %v301_v2 = vld [vmem:[%s405_s1 + $0x8] sm:$0xff]  }
   0x2   :  { %286 = vmatprep.subr.bf16.mxu1 %v310_v0  ;;  %294 = vmatprep.mubr.msk.bf16.mxu1 %vm311_vm1, %v310_v0  ;;  %v34_v3 = vld [vmem:[%s406_s0] sm:$0xff]  ;;  %v35_v4 = vld [vmem:[%s406_s0 + $0x8] sm:$0xff]  ;;  %v304_v8 = vld [vmem:[%s407_s3 + $0x10] sm:$0xff]  }
   0x3   :  { %279 = vmatpush3.bf16.msra.mxu0 %v300_v1  ;;  %v302_v5 = vld [vmem:[%s407_s3] sm:$0xff]   ;;  %v303_v6 = vld [vmem:[%s407_s3 + $0x8] sm:$0xff]   ;;  %v36_v7 = vpack.c.bf16 %v35_v4, %v34_v3  ;;  %v305_v9 = vld [vmem:[%s407_s3 + $0x18] sm:$0xff]  }
   0x4   :  { %280 = vmatprep.subr.bf16.mxu0 %v310_v0  ;;  %287 = vmatpush3.bf16.msra.mxu1 %v302_v5  ;;  %v258_v10 = vld [vmem:[%s408_s2] ss:$0 sm:$0xff] }
   0x5   :  { %288 = vmatprep.subr.bf16.mxu1 %v310_v0  ;;  %v267_v29 = vld [vmem:[%s409_s4] ss:$0 sm:$0xff] }
   0x6   :  { %v268_v54 = vld [vmem:[%s410_s5] ss:$0 sm:$0xff] }
   0x7   :  { %281 = vmatpush3.bf16.msra.mxu0 %v301_v2  ;;  %v269_v56 = vld [vmem:[%s411_s6] ss:$0 sm:$0xff] }
   0x8   :  { %289 = vmatpush3.bf16.msra.mxu1 %v303_v6  ;;  %v107_v20 = vld [vmem:[#allocation2] sm:$0xff]  ;;  %v108_v22 = vld [vmem:[#allocation2 + $0x8] sm:$0xff] }
   0x9   :  { %290 = vmatprep.subr.bf16.mxu1 %v310_v0 }
   0xa   :  { %283 = vmatmul.mubr.msk.bf16.vlgmr.msra.gmra.mrb[0].mxu0 %vm31_vm0, %v36_v7 }
   0xc   :  { %291 = vmatpush3.bf16.msra.mxu1 %v304_v8 }
   0xd   :  { %292 = vmatprep.subr.bf16.mxu1 %v310_v0 }
  0x10   :  { %293 = vmatpush3.bf16.msra.mxu1 %v305_v9 }
  0xdd   :  { %v98_v11 = vpop.f32.mrb[0].mxu0 }
  0xde   :  { %v99_v12 = vadd.f32 %v258_v10, %v98_v11  ;;  %v284_v13 = vpop.f32.mrb[1].mxu0 }
  0xdf   :  { %v101_v14 = vpop.f32.mrb[2].mxu0 }
  0xe0   :  { %v102_v15 = vadd.f32 %v258_v10, %v101_v14  ;;  %v285_v16 = vpop.f32.mrb[3].mxu0  ;;  %v105_v17 = vmax.f32 %v99_v12, 0.0 }
  0xe2   :  { %v106_v18 = vmax.f32 %v102_v15, 0.0 }
  0xe4   :  { %v109_v19 = vpack.c.bf16 %v106_v18, %v105_v17 }
  0xe6   :  { %295 = vmatmul.mubr.msk.bf16.vlgmr.msra.gmra.mrb[0].mxu1 %vm142_vm2, %v109_v19 }
 0x1b9   :  { %v180_v21 = vpop.f32.mrb[0].mxu1 }
 0x1ba   :  { %v187_v23 = vadd.f32 %v180_v21, %v107_v20  ;;  %v296_v24 = vpop.f32.mrb[1].mxu1 }
 0x1bb   :  { %v183_v25 = vpop.f32.mrb[2].mxu1 }
 0x1bc   :  { %189 = vst.msk [vmem:[#allocation2] sm:$0xff] %vm31_vm0, %v187_v23  ;;  %v188_v26 = vadd.f32 %v183_v25, %v108_v22  ;;  %v297_v27 = vpop.f32.mrb[3].mxu1 }
 0x1be   :  { %190 = vst.msk [vmem:[#allocation2 + $0x8] sm:$0xff] %vm31_vm0, %v188_v26 }
 0x1c3   :  { %v194_v28 = vld [vmem:[#allocation2] sm:$0xff] }
 0x1c4   :  { %v196_v30 = vadd.f32 %v194_v28, %v34_v3 }
 0x1c5   :  { %v195_v31 = vld [vmem:[#allocation2 + $0x8] sm:$0xff] }
 0x1c6   :  { %v205_v32 = vadd.f32 %v267_v29, %v196_v30  ;;  %v197_v33 = vadd.f32 %v195_v31, %v35_v4 }
 0x1c8   :  { %v207_v34 = vsel %vm31_vm0, %v205_v32, 0.0  ;;  %v206_v35 = vadd.f32 %v267_v29, %v197_v33 }
 0x1c9   :  { %208 = vadd.xlane.f32.xlu0 %v207_v34 }
 0x1ca   :  { %v210_v36 = vsel %vm31_vm0, %v206_v35, 0.0 }
 0x1cd   :  { %211 = vadd.xlane.f32.xlu0 %v210_v36 }
 0x256   :  { %v209_v37 = vpop.xlane.xlu0 %208 }
 0x257   :  { %v214_v38 = vmul.f32 0.03125, %v209_v37 }
 0x259   :  { %v216_v39 = vsub.f32 %v205_v32, %v214_v38 }
 0x25a   :  { %v212_v40 = vpop.xlane.xlu0 %211 }
 0x25b   :  { %v215_v41 = vmul.f32 0.03125, %v212_v40  ;;  %v218_v42 = vmul.f32 %v216_v39, %v216_v39 }
 0x25d   :  { %v217_v43 = vsub.f32 %v206_v35, %v215_v41  ;;  %v220_v44 = vsel %vm31_vm0, %v218_v42, 0.0 }
 0x25e   :  { %221 = vadd.xlane.f32.xlu1 %v220_v44 }
 0x25f   :  { %v219_v45 = vmul.f32 %v217_v43, %v217_v43 }
 0x261   :  { %v223_v46 = vsel %vm31_vm0, %v219_v45, 0.0 }
 0x262   :  { %224 = vadd.xlane.f32.xlu1 %v223_v46 }
 0x2eb   :  { %v222_v47 = vpop.xlane.xlu1 %221 }
 0x2ec   :  { %v226_v48 = vmul.f32 0.03125, %v222_v47 }
 0x2ee   :  { %v229_v49 = vadd.f32 1e-05, %v226_v48 }
 0x2ef   :  { %v225_v50 = vpop.xlane.xlu1 %224 }
 0x2f0   :  { %306 = vrsqrt.f32 %v229_v49  ;;  %v227_v51 = vmul.f32 0.03125, %v225_v50 }
 0x2f2   :  { %v230_v52 = vadd.f32 1e-05, %v227_v51 }
 0x2f4   :  { %308 = vrsqrt.f32 %v230_v52 }
 0x2fa   :  { %v307_v53 = vpop.eup %306 }
 0x2fb   :  { %v233_v55 = vmul.f32 %v307_v53, %v216_v39 }
 0x2fd   :  { %v241_v57 = vmul.f32 %v268_v54, %v233_v55 }
 0x2fe   :  { %v309_v58 = vpop.eup %308 }
 0x2ff   :  { %v250_v59 = vadd.f32 %v269_v56, %v241_v57  ;;  %v234_v60 = vmul.f32 %v309_v58, %v217_v43 }
 0x301   :  { %252 = vst.msk [vmem:[%s412_s7] sm:$0xff] %vm31_vm0, %v250_v59  ;;  %v242_v61 = vmul.f32 %v268_v54, %v234_v60 }
 0x303   :  { %v251_v62 = vadd.f32 %v269_v56, %v242_v61 }
 0x305   :  { %253 = vst.msk [vmem:[%s412_s7 + $0x8] sm:$0xff] %vm31_vm0, %v251_v62 }

// kernel: _decoder_forward.6
= control target key start
LH: loop header
LB: loop body
LE: loop exit
PB: predicated region body
PF: predicated region fallthrough
CT: control target
= control target key end

     0   :  { %s1392_s13 = smov 0   ;;  %s1547_s0 = inlined_call_operand.vmem [shape: f32[2,8,32], index: 0, kind: input, shape index: {}]   ;;  %s1548_s1 = inlined_call_operand.vmem [shape: f32[2,1,8], index: 1, kind: input, shape index: {}]   ;;  %s1549_s2 = inlined_call_operand.vmem [shape: bf16[32,32], index: 2, kind: input, shape index: {}]   ;;  %s1550_s3 = inlined_call_operand.vmem [shape: f32[1,32], index: 3, kind: input, shape index: {}]   ;;  %s1551_s4 = inlined_call_operand.vmem [shape: bf16[32,64], index: 4, kind: input, shape index: {}]   ;;  %s1552_s5 = inlined_call_operand.vmem [shape: f32[1,64], index: 5, kind: input, shape index: {}]   ;;  %s1553_s6 = inlined_call_operand.vmem [shape: bf16[32,32], index: 6, kind: input, shape index: {}]   ;;  %s1554_s7 = inlined_call_operand.vmem [shape: f32[1,32], index: 7, kind: input, shape index: {}]   ;;  %s1555_s8 = inlined_call_operand.vmem [shape: f32[1,32], index: 8, kind: input, shape index: {}]   ;;  %s1556_s9 = inlined_call_operand.vmem [shape: f32[1,32], index: 9, kind: input, shape index: {}]   ;;  %s1557_s10 = inlined_call_operand.vmem [shape: f32[2,8,32], index: 10, kind: output, shape index: {}]  }
   0x1 LB: > { %s1144_s14 = sadd.s32 4294967295, %s1323_s13   ;;  %p1148_p0 = scmp.ge.s32.totalorder %s1323_s13, 1  ;;  %s1323_s13 = sphi %s1392_s13, %s20_s13  }
   0x2   : > { %p319_p1 = scmp.lt.s32.totalorder %s1323_s13, 3 }
   0x4   : > { %p320_p2 = pnand %p1148_p0, %p319_p1 }
   0x5   : > { %v1293_v0 = vld [vmem:[%s1551_s4] sm:$0xff] (!%p320_p2)   ;;  %v1325_v1 = vmov (!%p320_p2), 0.0   ;;  %v1295_v3 = vld [vmem:[%s1551_s4 + $0x8] sm:$0xff] (!%p320_p2)   ;;  %vm1326_vm0 = vmmov (!%p320_p2), 0   ;;  %p358_p3 = scmp.lt.s32.totalorder (!%p320_p2), %s1144_s14, 1  ;;  %vm396_vm1 = vcmask (!%p320_p2), 261120   ;;  %v510_v31 = vlaneseq (!%p320_p2) }
   0x6   : > { %323 = sbr.rel (%p320_p2) target bundleno = 1774 (0x6ee), region = 60  ;;  %1209 = vmatprep.subr.bf16.mxu1 (!%p320_p2), %v1325_v1  ;;  %1201 = vmatprep.subr.bf16.mxu0 (!%p320_p2), %v1325_v1  ;;  %v1294_v2 = vld [vmem:[%s1549_s2] sm:$0xff] (!%p320_p2)   ;;  %v1296_v4 = vld [vmem:[%s1549_s2 + $0x8] sm:$0xff] (!%p320_p2)   ;;  %vm518_vm2 = vcmask (!%p320_p2), 64512   ;;  %s1327_s11 = smov (!%p320_p2), 112   ;;  %vm585_vm6 = vcmask (!%p320_p2), 1043456  }
   0x7   : > { %1210 = vmatpush3.bf16.msra.mxu1 (!%p320_p2), %v1293_v0  ;;  %1213 = vmatprep.mubr.msk.bf16.mxu1 (!%p320_p2), %vm1326_vm0, %v1325_v1  ;;  %v1155_v7 = vld [vmem:[%s1552_s5] ss:$0 sm:$0xff] (!%p320_p2)  ;;  %s1328_s12 = smov (!%p320_p2), 120   ;;  %s1329_s15 = smov (!%p320_p2), 104   ;;  %v511_v32 = vshrl.u32 (!%p320_p2), %v510_v31, 7  ;;  %v513_v33 = vand.u32 (!%p320_p2), 127, %v510_v31 }
   0x8   : > { %1211 = vmatprep.subr.bf16.mxu1 (!%p320_p2), %v1325_v1  ;;  %1202 = vmatpush3.bf16.msra.mxu0 (!%p320_p2), %v1294_v2  ;;  %v1151_v8 = vld [vmem:[%s1550_s3] ss:$0 sm:$0xff] (!%p320_p2)  ;;  %s1330_s19 = smov (!%p320_p2), 96   ;;  %s1331_s20 = smov (!%p320_p2), 80   ;;  %vm979_vm7 = vcmask (!%p320_p2), 130048   ;;  %vm981_vm8 = vcmask (!%p320_p2), 195584  }
   0x9   : > { %1203 = vmatprep.subr.bf16.mxu0 (!%p320_p2), %v1325_v1  ;;  %1205 = vmatprep.mubr.msk.bf16.mxu0 (!%p320_p2), %vm1326_vm0, %v1325_v1  ;;  %vm514_vm4 = vcmp.gt.s32.totalorder (!%p320_p2), %v513_v33, %v511_v32  ;;  %s1332_s21 = smov (!%p320_p2), 72   ;;  %s1333_s22 = smov (!%p320_p2), 88  }
   0xa   : > { %s1335_s29 = smov (!%p320_p2), 16   ;;  %s1336_s30 = smov (!%p320_p2), 24  }
   0xb   : > { %1212 = vmatpush3.bf16.msra.mxu1 (!%p320_p2), %v1295_v3 }
   0xc   : > { %1204 = vmatpush3.bf16.msra.mxu0 (!%p320_p2), %v1296_v4  ;;  %1223 = vmatprep.subr.bf16.mxu1 (!%p320_p2), %v1325_v1 }
   0xd   : > { %s1561_s14 = smov (!%p358_p3, %s1144_s14), 1  ;;  %1217 = vmatprep.subr.bf16.mxu0 %v1325_v1 }
   0xe   : > { %s1149_s23 = sshll.u32 %s1561_s14, 3  ;;  %s364_s18 = scalar_lea.vmem %s1548_s1, %s1561_s14 }
   0xf   : > { %s361_s26 = scalar_lea.vmem %s1547_s0, %s1149_s23  ;;  %v1159_v34 = vld [vmem:[%s364_s18] ss:$0 sm:$0xff] }
  0x10   : > { %v1429_v5 = vld [vmem:[%s361_s26] sm:$0xff]  ;;  %vm509_vm3 = vcmp.gt.f32.partialorder %v1159_v34, 0.5  ;;  %s1334_s26 = smov 8  }
  0x11   : > { %v372_v6 = vpack.c.bf16 %v1429_v5, %v1429_v5  ;;  %vm1476_vm5 = vmor %vm509_vm3, %vm514_vm4 }
  0x13   : > { %1214 = vmatmul.mubr.msk.bf16.vlgmr.msra.gmra.mrb[0].mxu1 %vm396_vm1, %v372_v6  ;;  %1206 = vmatmul.mubr.msk.bf16.vlgmr.msra.gmra.mrb[0].mxu0 %vm396_vm1, %v372_v6 }
  0x14   : > { %1219 = vmatprep.mubr.msk.bf16.mxu0 %vm1326_vm0, %v1325_v1  ;;  %1225 = vmatprep.mubr.msk.bf16.mxu1 %vm1326_vm0, %v1325_v1 }
  0xe6   : > { %v497_v9 = vpop.f32.mrb[0].mxu1  ;;  %v434_v10 = vpop.f32.mrb[0].mxu0 }
  0xe7   : > { %v498_v11 = vadd.f32 %v1155_v7, %v497_v9  ;;  %v1215_v12 = vpop.f32.mrb[1].mxu1  ;;  %v435_v13 = vadd.f32 %v1151_v8, %v434_v10  ;;  %v1207_v14 = vpop.f32.mrb[1].mxu0 }
  0xe8   : > { %v500_v15 = vpop.f32.mrb[2].mxu1  ;;  %v437_v16 = vpop.f32.mrb[2].mxu0 }
  0xe9   : > { %v1446_v17 = vpack.c.bf16 %v498_v11, %v498_v11  ;;  %v1216_v18 = vpop.f32.mrb[3].mxu1  ;;  %v1208_v19 = vpop.f32.mrb[3].mxu0  ;;  %v516_v20 = vpack.c.bf16 %v435_v13, %v435_v13 }
  0xeb   : > { %744 = vrot.lane.b32.xlu1 %v1446_v17, %s1327_s11  ;;  %632 = vrot.lane.b32.xlu0 %v1446_v17, %s1328_s12  ;;  %v523_v21 = vsel %vm518_vm2, %v1446_v17, 0 }
  0xec   : > { %1218 = vmatpush3.bf16.xpose.msra.mxu0 %v523_v21 }
  0xed   : > { %1229 = vmatprep.subr.bf16.mxu0 %v1325_v1 }
  0xef   : > { %742 = vrot.lane.b32.xlu1 %v516_v20, %s1327_s11  ;;  %630 = vrot.lane.b32.xlu0 %v516_v20, %s1328_s12 }
  0xf3   : > { %854 = vrot.lane.b32.xlu1 %v516_v20, %s1329_s15  ;;  %856 = vrot.lane.b32.xlu0 %v1446_v17, %s1329_s15 }
  0xf4   : > { %1220 = vmatmul.mubr.msk.bf16.vlgmr.msra.gmra.mrb[4].mxu0 %vm518_vm2, %v516_v20 }
  0xf5   : > { %1231 = vmatprep.mubr.msk.bf16.mxu0 %vm1326_vm0, %v1325_v1 }
 0x15d   : > { %v633_v22 = vpop.permute.xlu0 %632  ;;  %v745_v24 = vpop.permute.xlu1 %744 }
 0x15e   : > { %v638_v23 = vsel %vm518_vm2, %v633_v22, 0  ;;  %v750_v26 = vsel %vm518_vm2, %v745_v24, 0 }
 0x15f   : > { %1230 = vmatpush3.bf16.xpose.msra.mxu0 %v638_v23 }
 0x160   : > { %1241 = vmatprep.subr.bf16.mxu0 %v1325_v1 }
 0x161   : > { %v631_v25 = vpop.permute.xlu0 %630  ;;  %v743_v28 = vpop.permute.xlu1 %742 }
 0x165   : > { %v857_v27 = vpop.permute.xlu0 %856  ;;  %v855_v30 = vpop.permute.xlu1 %854 }
 0x166   : > { %1232 = vmatmul.mubr.msk.bf16.vlgmr.msra.gmra.mrb[8].mxu0 %vm518_vm2, %v631_v25  ;;  %v862_v29 = vsel %vm518_vm2, %v857_v27, 0 }
 0x167   : > { %1242 = vmatpush3.bf16.xpose.msra.mxu0 %v750_v26  ;;  %1243 = vmatprep.mubr.msk.bf16.mxu0 %vm1326_vm0, %v1325_v1 }
 0x168   : > { %1253 = vmatprep.subr.bf16.mxu0 %v1325_v1 }
 0x16e   : > { %1244 = vmatmul.mubr.msk.bf16.vlgmr.msra.gmra.mrb[12].mxu0 %vm518_vm2, %v743_v28 }
 0x16f   : > { %1254 = vmatpush3.bf16.xpose.msra.mxu0 %v862_v29  ;;  %1255 = vmatprep.mubr.msk.bf16.mxu0 %vm1326_vm0, %v1325_v1 }
 0x170   : > { %1265 = vmatprep.subr.bf16.mxu0 %v1325_v1 }
 0x176   : > { %1256 = vmatmul.mubr.msk.bf16.vlgmr.msra.gmra.mrb[16].mxu0 %vm518_vm2, %v855_v30 }
 0x177   : > { %1269 = vmatprep.mubr.msk.bf16.mxu0 %vm1326_vm0, %v1325_v1 }
 0x1c7   : > { %v559_v35 = vpop.f32.mrb[4].mxu0 }
 0x1c8   : > { %v565_v37 = vmul.f32 0.35355338, %v559_v35  ;;  %v1221_v38 = vpop.f32.mrb[5].mxu0 }
 0x1c9   : > { %v562_v39 = vpop.f32.mrb[6].mxu0 }
 0x1ca   : > { %v1222_v40 = vpop.f32.mrb[7].mxu0  ;;  %v566_v41 = vsel %vm1476_vm5, -1e+09, %v565_v37 }
 0x1cb   : > { %v567_v42 = vsel %vm518_vm2, %v566_v41, -inf }
 0x1cc   : > { %568 = vmax.xlane.f32.xlu0 %v567_v42 }
 0x239   : > { %v674_v43 = vpop.f32.mrb[8].mxu0 }
 0x23a   : > { %v680_v44 = vmul.f32 0.35355338, %v674_v43  ;;  %v1233_v45 = vpop.f32.mrb[9].mxu0 }
 0x23b   : > { %v677_v46 = vpop.f32.mrb[10].mxu0 }
 0x23c   : > { %v1234_v47 = vpop.f32.mrb[11].mxu0  ;;  %v681_v48 = vsel %vm1476_vm5, -1e+09, %v680_v44 }
 0x23d   : > { %v682_v49 = vsel %vm518_vm2, %v681_v48, -inf }
 0x23e   : > { %683 = vmax.xlane.f32.xlu1 %v682_v49 }
 0x241   : > { %v786_v50 = vpop.f32.mrb[12].mxu0 }
 0x242   : > { %v792_v51 = vmul.f32 0.35355338, %v786_v50  ;;  %v1245_v52 = vpop.f32.mrb[13].mxu0  ;;  %v1297_v50 = vld [vmem:[%s1553_s6] sm:$0xff]  }
 0x243   : > { %v789_v53 = vpop.f32.mrb[14].mxu0  ;;  %1266 = vmatpush3.bf16.msra.mxu0 %v1297_v50 }
 0x244   : > { %v1246_v54 = vpop.f32.mrb[15].mxu0  ;;  %v793_v55 = vsel %vm1476_vm5, -1e+09, %v792_v51  ;;  %1267 = vmatprep.subr.bf16.mxu0 %v1325_v1 }
 0x245   : > { %v794_v56 = vsel %vm518_vm2, %v793_v55, -inf }
 0x246   : > { %795 = vmax.xlane.f32.xlu0 %v794_v56 }
 0x249   : > { %v898_v57 = vpop.f32.mrb[16].mxu0 }
 0x24a   : > { %v904_v58 = vmul.f32 0.35355338, %v898_v57  ;;  %v1257_v59 = vpop.f32.mrb[17].mxu0 }
 0x24b   : > { %v901_v60 = vpop.f32.mrb[18].mxu0 }
 0x24c   : > { %v1258_v61 = vpop.f32.mrb[19].mxu0  ;;  %v905_v62 = vsel %vm1476_vm5, -1e+09, %v904_v58 }
 0x24d   : > { %v906_v63 = vsel %vm518_vm2, %v905_v62, -inf }
 0x24e   : > { %907 = vmax.xlane.f32.xlu0 %v906_v63 }
 0x259   : > { %v569_v0 = vpop.xlane.xlu0 %568 }
 0x25a   : > { %v570_v2 = vsub.f32 %v566_v41, %v569_v0 }
 0x25c   : > { %v571_v3 = vmul.f32 1.442695, %v570_v2 }
 0x25e   : > { %1299 = vpow2.f32 %v571_v3 }
 0x268   : > { %v1300_v4 = vpop.eup %1299 }
 0x269   : > { %v573_v6 = vsel %vm518_vm2, %v1300_v4, 0.0 }
 0x26a   : > { %574 = vadd.xlane.f32.xlu1 %v573_v6 }
 0x27b   : > { %580 = vrot.lane.b32.xlu1 %v1446_v17, %s1330_s19 }
 0x2cb   : > { %v684_v7 = vpop.xlane.xlu1 %683 }
 0x2cc   : > { %v685_v8 = vsub.f32 %v681_v48, %v684_v7 }
 0x2ce   : > { %v686_v9 = vmul.f32 1.442695, %v685_v8  ;;  %v1168_v8 = vld [vmem:[%s1554_s7] ss:$0 sm:$0xff] }
 0x2d0   : > { %1301 = vpow2.f32 %v686_v9 }
 0x2d3   : > { %v796_v10 = vpop.xlane.xlu0 %795 }
 0x2d4   : > { %v797_v11 = vsub.f32 %v793_v55, %v796_v10  ;;  %v1298_v55 = vld [vmem:[%s1553_s6 + $0x8] sm:$0xff]  }
 0x2d5   : > { %1268 = vmatpush3.bf16.msra.mxu0 %v1298_v55 }
 0x2d6   : > { %v798_v12 = vmul.f32 1.442695, %v797_v11 }
 0x2d8   : > { %1303 = vpow2.f32 %v798_v12 }
 0x2da   : > { %v1302_v13 = vpop.eup %1301 }
 0x2db   : > { %v908_v14 = vpop.xlane.xlu0 %907  ;;  %v688_v15 = vsel %vm518_vm2, %v1302_v13, 0.0 }
 0x2dc   : > { %v909_v16 = vsub.f32 %v905_v62, %v908_v14  ;;  %689 = vadd.xlane.f32.xlu0 %v688_v15 }
 0x2de   : > { %v910_v18 = vmul.f32 1.442695, %v909_v16 }
 0x2e0   : > { %1305 = vpow2.f32 %v910_v18 }
 0x2e2   : > { %v1304_v19 = vpop.eup %1303 }
 0x2e3   : > { %v800_v20 = vsel %vm518_vm2, %v1304_v19, 0.0 }
 0x2e4   : > { %801 = vadd.xlane.f32.xlu1 %v800_v20 }
 0x2ea   : > { %v1306_v21 = vpop.eup %1305 }
 0x2eb   : > { %v912_v22 = vsel %vm518_vm2, %v1306_v21, 0.0 }
 0x2ec   : > { %913 = vadd.xlane.f32.xlu0 %v912_v22 }
 0x2f5   : > { %806 = vrot.lane.b32.xlu1 %v1446_v17, %s1331_s20 }
 0x2f7   : > { %v575_v23 = vpop.xlane.xlu1 %574 }
 0x2f8   : > { %1307 = vrcp.f32 %v575_v23 }
 0x2f9   : > { %918 = vrot.lane.b32.xlu1 %v1446_v17, %s1332_s21  ;;  %s368_s21 = scalar_lea.vmem %s1557_s10, %s1149_s23 }
 0x2fb   : > { %v581_v24 = vpop.permute.xlu1 %580 }
 0x2fc   : > { %v587_v25 = vsel %vm585_vm6, %v581_v24, 0 }
 0x2fd   : > { %1224 = vmatpush3.bf16.msra.mxu1 %v587_v25 }
 0x2fe   : > { %1235 = vmatprep.subr.bf16.mxu1 %v1325_v1 }
 0x302   : > { %v1308_v26 = vpop.eup %1307  ;;  %694 = vrot.lane.b32.xlu0 %v1446_v17, %s1333_s22 }
 0x303   : > { %v577_v27 = vmul.f32 %v1308_v26, %v1300_v4 }
 0x305   : > { %v578_v28 = vpack.c.bf16 %v577_v27, %v577_v27  ;;  %v1173_v27 = vld [vmem:[%s1556_s9] ss:$0 sm:$0xff] }
 0x307   : > { %1226 = vmatmul.mubr.msk.bf16.vlgmr.msra.gmra.mrb[4].mxu1 %vm518_vm2, %v578_v28 }
 0x308   : > { %1237 = vmatprep.mubr.msk.bf16.mxu1 %vm1326_vm0, %v1325_v1 }
 0x369   : > { %v690_v29 = vpop.xlane.xlu0 %689 }
 0x36a   : > { %1309 = vrcp.f32 %v690_v29 }
 0x371   : > { %v802_v30 = vpop.xlane.xlu1 %801 }
 0x372   : > { %1311 = vrcp.f32 %v802_v30 }
 0x374   : > { %v1310_v31 = vpop.eup %1309 }
 0x375   : > { %v692_v33 = vmul.f32 %v1310_v31, %v1302_v13  ;;  %v807_v36 = vpop.permute.xlu1 %806 }
 0x376   : > { %v812_v38 = vsel %vm585_vm6, %v807_v36, 0 }
 0x377   : > { %v693_v17 = vpack.c.bf16 %v692_v33, %v692_v33 }
 0x379   : > { %v914_v32 = vpop.xlane.xlu0 %913  ;;  %v919_v40 = vpop.permute.xlu1 %918 }
 0x37a   : > { %1313 = vrcp.f32 %v914_v32  ;;  %v924_v43 = vsel %vm585_vm6, %v919_v40, 0 }
 0x37c   : > { %v1312_v37 = vpop.eup %1311 }
 0x37d   : > { %v695_v34 = vpop.permute.xlu0 %694  ;;  %v804_v39 = vmul.f32 %v1312_v37, %v1304_v19 }
 0x37e   : > { %v700_v35 = vsel %vm585_vm6, %v695_v34, 0 }
 0x37f   : > { %1236 = vmatpush3.bf16.msra.mxu1 %v700_v35  ;;  %v805_v41 = vpack.c.bf16 %v804_v39, %v804_v39 }
 0x380   : > { %1247 = vmatprep.subr.bf16.mxu1 %v1325_v1 }
 0x382   : > { %1238 = vmatmul.mubr.msk.bf16.vlgmr.msra.gmra.mrb[8].mxu1 %vm518_vm2, %v693_v17 }
 0x383   : > { %1248 = vmatpush3.bf16.msra.mxu1 %v812_v38  ;;  %1249 = vmatprep.mubr.msk.bf16.mxu1 %vm1326_vm0, %v1325_v1 }
 0x384   : > { %1259 = vmatprep.subr.bf16.mxu1 %v1325_v1  ;;  %v1314_v42 = vpop.eup %1313 }
 0x385   : > { %v916_v44 = vmul.f32 %v1314_v42, %v1306_v21 }
 0x387   : > { %v917_v45 = vpack.c.bf16 %v916_v44, %v916_v44 }
 0x38a   : > { %1250 = vmatmul.mubr.msk.bf16.vlgmr.msra.gmra.mrb[12].mxu1 %vm518_vm2, %v805_v41 }
 0x38b   : > { %1260 = vmatpush3.bf16.msra.mxu1 %v924_v43  ;;  %1261 = vmatprep.mubr.msk.bf16.mxu1 %vm1326_vm0, %v1325_v1 }
 0x392   : > { %1262 = vmatmul.mubr.msk.bf16.vlgmr.msra.gmra.mrb[16].mxu1 %vm518_vm2, %v917_v45 }
 0x3da   : > { %v623_v46 = vpop.f32.mrb[4].mxu1 }
 0x3db   : > { %v1227_v47 = vpop.f32.mrb[5].mxu1 }
 0x3dc   : > { %v626_v48 = vpop.f32.mrb[6].mxu1 }
 0x3dd   : > { %v1228_v49 = vpop.f32.mrb[7].mxu1 }
 0x455   : > { %v736_v51 = vpop.f32.mrb[8].mxu1 }
 0x456   : > { %967 = vrot.lane.b32.xlu0 %v736_v51, %s1334_s26  ;;  %v1239_v52 = vpop.f32.mrb[9].mxu1 }
 0x457   : > { %v739_v53 = vpop.f32.mrb[10].mxu1 }
 0x458   : > { %v1240_v54 = vpop.f32.mrb[11].mxu1 }
 0x45d   : > { %v848_v56 = vpop.f32.mrb[12].mxu1 }
 0x45e   : > { %971 = vrot.lane.b32.xlu1 %v848_v56, %s1335_s29  ;;  %v1251_v57 = vpop.f32.mrb[13].mxu1 }
 0x45f   : > { %v851_v58 = vpop.f32.mrb[14].mxu1 }
 0x460   : > { %v1252_v59 = vpop.f32.mrb[15].mxu1 }
 0x465   : > { %v960_v60 = vpop.f32.mrb[16].mxu1 }
 0x466   : > { %975 = vrot.lane.b32.xlu0 %v960_v60, %s1336_s30  ;;  %v1263_v1 = vpop.f32.mrb[17].mxu1 }
 0x467   : > { %v963_v61 = vpop.f32.mrb[18].mxu1 }
 0x468   : > { %v1264_v62 = vpop.f32.mrb[19].mxu1 }
 0x4c8   : > { %v968_v63 = vpop.permute.xlu0 %967 }
 0x4c9   : > { %v978_v2 = vsel %vm518_vm2, %v623_v46, %v968_v63 }
 0x4d0   : > { %v972_v0 = vpop.permute.xlu1 %971 }
 0x4d1   : > { %v980_v3 = vsel %vm979_vm7, %v978_v2, %v972_v0 }
 0x4d8   : > { %v976_v4 = vpop.permute.xlu0 %975 }
 0x4d9   : > { %v982_v6 = vsel %vm981_vm8, %v980_v3, %v976_v4 }
 0x4da   : > { %v983_v7 = vpack.c.bf16 %v982_v6, %v982_v6 }
 0x4dc   : > { %1270 = vmatmul.mubr.msk.bf16.vlgmr.msra.gmra.mrb[20].mxu0 %vm396_vm1, %v983_v7 }
 0x5af   : > { %v1044_v9 = vpop.f32.mrb[20].mxu0 }
 0x5b0   : > { %v1045_v10 = vadd.f32 %v1168_v8, %v1044_v9  ;;  %v1271_v11 = vpop.f32.mrb[21].mxu0 }
 0x5b1   : > { %v1047_v12 = vpop.f32.mrb[22].mxu0 }
 0x5b2   : > { %v1272_v13 = vpop.f32.mrb[23].mxu0  ;;  %v1050_v14 = vadd.f32 %v1045_v10, %v1429_v5  ;;  %v1172_v5 = vld [vmem:[%s1555_s8] ss:$0 sm:$0xff] }
 0x5b4   : > { %v1051_v15 = vsel %vm396_vm1, %v1050_v14, 0.0 }
 0x5b5   : > { %1052 = vadd.xlane.f32.xlu1 %v1051_v15 }
 0x642   : > { %v1053_v16 = vpop.xlane.xlu1 %1052 }
 0x643   : > { %v1055_v18 = vmul.f32 0.03125, %v1053_v16 }
 0x645   : > { %v1056_v19 = vsub.f32 %v1050_v14, %v1055_v18 }
 0x647   : > { %v1057_v20 = vmul.f32 %v1056_v19, %v1056_v19 }
 0x649   : > { %v1058_v21 = vsel %vm396_vm1, %v1057_v20, 0.0 }
 0x64a   : > { %1059 = vadd.xlane.f32.xlu0 %v1058_v21 }
 0x6d7   : > { %v1060_v22 = vpop.xlane.xlu0 %1059 }
 0x6d8   : > { %v1061_v23 = vmul.f32 0.03125, %v1060_v22 }
 0x6da   : > { %v1062_v24 = vadd.f32 1e-05, %v1061_v23 }
 0x6dc   : > { %1315 = vrsqrt.f32 %v1062_v24 }
 0x6e6   : > { %v1316_v25 = vpop.eup %1315 }
 0x6e7   : > { %v1064_v26 = vmul.f32 %v1316_v25, %v1056_v19 }
 0x6e9   : > { %v1072_v28 = vmul.f32 %v1172_v5, %v1064_v26 }
 0x6eb   : > { %v1080_v29 = vadd.f32 %v1173_v27, %v1072_v28 }
 0x6ed   : > { %1081 = vst.msk [vmem:[%s368_s21] sm:$0xff] %vm396_vm1, %v1080_v29 }
 0x6ee PF: > { %s20_s13 = sadd.s32 1, %s1323_s13  }
 0x6ef   : > { %p17_p4 = scmp.ge.s32.totalorder %s20_s13, 4  }
 0x6f1   :  { %19 = sbr.rel (!%p17_p4) target bundleno = 1 (0x1), region = 93 }

// kernel: _decoder_forward.7
= control target key start
LH: loop header
LB: loop body
LE: loop exit
PB: predicated region body
PF: predicated region fallthrough
CT: control target
= control target key end

     0   :  { %s1537_s17 = smov 0   ;;  %s1539_s18 = smov 0   ;;  %s1704_s0 = inlined_call_operand.vmem [shape: f32[2,8,32], index: 0, kind: input, shape index: {}]   ;;  %s1705_s1 = inlined_call_operand.vmem [shape: f32[2,8,32], index: 1, kind: input, shape index: {}]   ;;  %s1706_s2 = inlined_call_operand.vmem [shape: f32[2,1,8], index: 2, kind: input, shape index: {}]   ;;  %s1707_s3 = inlined_call_operand.vmem [shape: bf16[32,32], index: 3, kind: input, shape index: {}]   ;;  %s1708_s4 = inlined_call_operand.vmem [shape: f32[1,32], index: 4, kind: input, shape index: {}]   ;;  %s1709_s5 = inlined_call_operand.vmem [shape: bf16[32,64], index: 5, kind: input, shape index: {}]   ;;  %s1710_s6 = inlined_call_operand.vmem [shape: f32[1,64], index: 6, kind: input, shape index: {}]   ;;  %s1711_s7 = inlined_call_operand.vmem [shape: bf16[32,32], index: 7, kind: input, shape index: {}]   ;;  %s1712_s8 = inlined_call_operand.vmem [shape: f32[1,32], index: 8, kind: input, shape index: {}]   ;;  %s1713_s9 = inlined_call_operand.vmem [shape: f32[1,32], index: 9, kind: input, shape index: {}]   ;;  %s1714_s10 = inlined_call_operand.vmem [shape: f32[1,32], index: 10, kind: input, shape index: {}]   ;;  %s1715_s11 = inlined_call_operand.vmem [shape: f32[2,8,32], index: 11, kind: output, shape index: {}]  }
   0x1   :  { %s1541_s19 = smov 0  }
   0x2 LB: > { %s33_s20 = sadd.s32 1, %s1459_s18  ;;  %p1255_p0 = scmp.ge.s32.totalorder %s1463_s19, 1  ;;  %s1463_s19 = sphi %s1541_s19, %s21_s19   ;;  %s1459_s18 = sphi %s1539_s18, %s1717_s18   ;;  %s1455_s17 = sphi %s1537_s17, %s1716_s17  }
   0x3   : > { %p35_p1 = scmp.ge.s32.totalorder %s33_s20, 2  ;;  %p372_p2 = scmp.lt.s32.totalorder %s1463_s19, 3 }
   0x5   : > { %s1719_s20 = smov (%p35_p1, %s33_s20), 0  ;;  %p373_p3 = pnand %p1255_p0, %p372_p2 }
   0x6   : > { %v1417_v0 = vld [vmem:[%s1709_s5] sm:$0xff] (!%p373_p3)   ;;  %v1465_v1 = vmov (!%p373_p3), 0.0   ;;  %v1419_v3 = vld [vmem:[%s1709_s5 + $0x8] sm:$0xff] (!%p373_p3)   ;;  %vm1466_vm0 = vmmov (!%p373_p3), 0   ;;  %p423_p4 = scmp.lt.s32.totalorder (!%p373_p3), %s1455_s17, 1  ;;  %vm472_vm1 = vcmask (!%p373_p3), 261120  }
   0x7   : > { %376 = sbr.rel (%p373_p3) target bundleno = 1775 (0x6ef), region = 64  ;;  %1317 = vmatprep.subr.bf16.mxu1 (!%p373_p3), %v1465_v1  ;;  %1309 = vmatprep.subr.bf16.mxu0 (!%p373_p3), %v1465_v1  ;;  %v1418_v2 = vld [vmem:[%s1707_s3] sm:$0xff] (!%p373_p3)   ;;  %v1420_v4 = vld [vmem:[%s1707_s3 + $0x8] sm:$0xff] (!%p373_p3)   ;;  %vm592_vm2 = vcmask (!%p373_p3), 64512   ;;  %s1467_s25 = smov (!%p373_p3), 112   ;;  %vm659_vm4 = vcmask (!%p373_p3), 1043456  }
   0x8   : > { %1318 = vmatpush3.bf16.msra.mxu1 (!%p373_p3), %v1417_v0  ;;  %1321 = vmatprep.mubr.msk.bf16.mxu1 (!%p373_p3), %vm1466_vm0, %v1465_v1  ;;  %v1263_v9 = vld [vmem:[%s1710_s6] ss:$0 sm:$0xff] (!%p373_p3)  ;;  %s1468_s26 = smov (!%p373_p3), 120   ;;  %s1469_s27 = smov (!%p373_p3), 104   ;;  %vm1053_vm5 = vcmask (!%p373_p3), 130048   ;;  %vm1055_vm6 = vcmask (!%p373_p3), 195584  }
   0x9   : > { %1319 = vmatprep.subr.bf16.mxu1 (!%p373_p3), %v1465_v1  ;;  %1310 = vmatpush3.bf16.msra.mxu0 (!%p373_p3), %v1418_v2  ;;  %v1259_v10 = vld [vmem:[%s1708_s4] ss:$0 sm:$0xff] (!%p373_p3)  ;;  %s1472_s14 = smov (!%p373_p3), 72   ;;  %s1473_s15 = smov (!%p373_p3), 88  }
   0xa   : > { %1311 = vmatprep.subr.bf16.mxu0 (!%p373_p3), %v1465_v1  ;;  %1313 = vmatprep.mubr.msk.bf16.mxu0 (!%p373_p3), %vm1466_vm0, %v1465_v1  ;;  %s1474_s22 = smov (!%p373_p3), 8  }
   0xc   : > { %1320 = vmatpush3.bf16.msra.mxu1 (!%p373_p3), %v1419_v3 }
   0xd   : > { %1312 = vmatpush3.bf16.msra.mxu0 (!%p373_p3), %v1420_v4  ;;  %1331 = vmatprep.subr.bf16.mxu1 (!%p373_p3), %v1465_v1 }
   0xe   : > { %s1721_s17 = smov (!%p423_p4, %s1455_s17), 1  ;;  %1325 = vmatprep.subr.bf16.mxu0 %v1465_v1 }
   0xf   : > { %s1578_s29 = sshll.u32 %s1721_s17, 3  ;;  %s436_s12 = scalar_lea.vmem %s1706_s2, %s1721_s17 }
  0x10   : > { %s433_s13 = scalar_lea.vmem %s1705_s1, %s1578_s29  ;;  %s429_s16 = scalar_lea.vmem %s1704_s0, %s1578_s29  ;;  %v1267_v33 = vld [vmem:[%s436_s12] ss:$0 sm:$0xff] }
  0x11   : > { %v446_v5 = vld [vmem:[%s433_s13] sm:$0xff]  ;;  %vm589_vm3 = vcmp.gt.f32.partialorder %v1267_v33, 0.5  ;;  %s1470_s17 = smov 96   ;;  %s1471_s13 = smov 80  }
  0x12   : > { %v516_v6 = vpack.c.bf16 %v446_v5, %v446_v5  ;;  %v1590_v7 = vld [vmem:[%s429_s16] sm:$0xff]  ;;  %s443_s16 = scalar_lea.vmem %s1715_s11, %s1578_s29 }
  0x13   : > { %v448_v8 = vpack.c.bf16 %v1590_v7, %v1590_v7 }
  0x14   : > { %1322 = vmatmul.mubr.msk.bf16.vlgmr.msra.gmra.mrb[0].mxu1 %vm472_vm1, %v516_v6 }
  0x15   : > { %1314 = vmatmul.mubr.msk.bf16.vlgmr.msra.gmra.mrb[0].mxu0 %vm472_vm1, %v448_v8  ;;  %1333 = vmatprep.mubr.msk.bf16.mxu1 %vm1466_vm0, %v1465_v1 }
  0x16   : > { %1327 = vmatprep.mubr.msk.bf16.mxu0 %vm1466_vm0, %v1465_v1 }
  0xe7   : > { %v577_v11 = vpop.f32.mrb[0].mxu1 }
  0xe8   : > { %v578_v12 = vadd.f32 %v1263_v9, %v577_v11  ;;  %v1323_v13 = vpop.f32.mrb[1].mxu1  ;;  %v510_v14 = vpop.f32.mrb[0].mxu0 }
  0xe9   : > { %v580_v15 = vpop.f32.mrb[2].mxu1  ;;  %v511_v16 = vadd.f32 %v1259_v10, %v510_v14  ;;  %v1315_v17 = vpop.f32.mrb[1].mxu0 }
  0xea   : > { %v1606_v18 = vpack.c.bf16 %v578_v12, %v578_v12  ;;  %v1324_v19 = vpop.f32.mrb[3].mxu1  ;;  %v513_v20 = vpop.f32.mrb[2].mxu0 }
  0xeb   : > { %v1316_v21 = vpop.f32.mrb[3].mxu0  ;;  %v590_v22 = vpack.c.bf16 %v511_v16, %v511_v16 }
  0xec   : > { %818 = vrot.lane.b32.xlu1 %v1606_v18, %s1467_s25  ;;  %706 = vrot.lane.b32.xlu0 %v1606_v18, %s1468_s26  ;;  %v597_v23 = vsel %vm592_vm2, %v1606_v18, 0 }
  0xed   : > { %1326 = vmatpush3.bf16.xpose.msra.mxu0 %v597_v23 }
  0xee   : > { %1337 = vmatprep.subr.bf16.mxu0 %v1465_v1 }
  0xf0   : > { %816 = vrot.lane.b32.xlu1 %v590_v22, %s1467_s25  ;;  %704 = vrot.lane.b32.xlu0 %v590_v22, %s1468_s26  ;;  %s1475_s25 = smov 16   ;;  %s1476_s26 = smov 24  }
  0xf4   : > { %928 = vrot.lane.b32.xlu1 %v590_v22, %s1469_s27  ;;  %930 = vrot.lane.b32.xlu0 %v1606_v18, %s1469_s27 }
  0xf5   : > { %1328 = vmatmul.mubr.msk.bf16.vlgmr.msra.gmra.mrb[4].mxu0 %vm592_vm2, %v590_v22 }
  0xf6   : > { %1339 = vmatprep.mubr.msk.bf16.mxu0 %vm1466_vm0, %v1465_v1 }
 0x15e   : > { %v707_v24 = vpop.permute.xlu0 %706  ;;  %v819_v26 = vpop.permute.xlu1 %818 }
 0x15f   : > { %v712_v25 = vsel %vm592_vm2, %v707_v24, 0  ;;  %v824_v28 = vsel %vm592_vm2, %v819_v26, 0 }
 0x160   : > { %1338 = vmatpush3.bf16.xpose.msra.mxu0 %v712_v25 }
 0x161   : > { %1349 = vmatprep.subr.bf16.mxu0 %v1465_v1 }
 0x162   : > { %v705_v27 = vpop.permute.xlu0 %704  ;;  %v817_v30 = vpop.permute.xlu1 %816 }
 0x166   : > { %v931_v29 = vpop.permute.xlu0 %930  ;;  %v929_v32 = vpop.permute.xlu1 %928 }
 0x167   : > { %1340 = vmatmul.mubr.msk.bf16.vlgmr.msra.gmra.mrb[8].mxu0 %vm592_vm2, %v705_v27  ;;  %v936_v31 = vsel %vm592_vm2, %v931_v29, 0 }
 0x168   : > { %1350 = vmatpush3.bf16.xpose.msra.mxu0 %v824_v28  ;;  %1351 = vmatprep.mubr.msk.bf16.mxu0 %vm1466_vm0, %v1465_v1 }
 0x169   : > { %1361 = vmatprep.subr.bf16.mxu0 %v1465_v1 }
 0x16f   : > { %1352 = vmatmul.mubr.msk.bf16.vlgmr.msra.gmra.mrb[12].mxu0 %vm592_vm2, %v817_v30 }
 0x170   : > { %1362 = vmatpush3.bf16.xpose.msra.mxu0 %v936_v31  ;;  %1363 = vmatprep.mubr.msk.bf16.mxu0 %vm1466_vm0, %v1465_v1 }
 0x171   : > { %1373 = vmatprep.subr.bf16.mxu0 %v1465_v1 }
 0x177   : > { %1364 = vmatmul.mubr.msk.bf16.vlgmr.msra.gmra.mrb[16].mxu0 %vm592_vm2, %v929_v32 }
 0x178   : > { %1377 = vmatprep.mubr.msk.bf16.mxu0 %vm1466_vm0, %v1465_v1 }
 0x1c8   : > { %v633_v34 = vpop.f32.mrb[4].mxu0 }
 0x1c9   : > { %v639_v35 = vmul.f32 0.35355338, %v633_v34  ;;  %v1329_v36 = vpop.f32.mrb[5].mxu0 }
 0x1ca   : > { %v636_v37 = vpop.f32.mrb[6].mxu0 }
 0x1cb   : > { %v1330_v38 = vpop.f32.mrb[7].mxu0  ;;  %v640_v39 = vsel %vm589_vm3, -1e+09, %v639_v35 }
 0x1cc   : > { %v641_v40 = vsel %vm592_vm2, %v640_v39, -inf }
 0x1cd   : > { %642 = vmax.xlane.f32.xlu0 %v641_v40 }
 0x23a   : > { %v748_v41 = vpop.f32.mrb[8].mxu0 }
 0x23b   : > { %v754_v42 = vmul.f32 0.35355338, %v748_v41  ;;  %v1341_v43 = vpop.f32.mrb[9].mxu0 }
 0x23c   : > { %v751_v44 = vpop.f32.mrb[10].mxu0 }
 0x23d   : > { %v1342_v45 = vpop.f32.mrb[11].mxu0  ;;  %v755_v46 = vsel %vm589_vm3, -1e+09, %v754_v42 }
 0x23e   : > { %v756_v47 = vsel %vm592_vm2, %v755_v46, -inf }
 0x23f   : > { %757 = vmax.xlane.f32.xlu1 %v756_v47 }
 0x242   : > { %v860_v48 = vpop.f32.mrb[12].mxu0 }
 0x243   : > { %v866_v49 = vmul.f32 0.35355338, %v860_v48  ;;  %v1353_v50 = vpop.f32.mrb[13].mxu0  ;;  %v1421_v48 = vld [vmem:[%s1711_s7] sm:$0xff]  }
 0x244   : > { %v863_v51 = vpop.f32.mrb[14].mxu0  ;;  %1374 = vmatpush3.bf16.msra.mxu0 %v1421_v48 }
 0x245   : > { %v1354_v52 = vpop.f32.mrb[15].mxu0  ;;  %v867_v53 = vsel %vm589_vm3, -1e+09, %v866_v49  ;;  %1375 = vmatprep.subr.bf16.mxu0 %v1465_v1 }
 0x246   : > { %v868_v54 = vsel %vm592_vm2, %v867_v53, -inf }
 0x247   : > { %869 = vmax.xlane.f32.xlu0 %v868_v54 }
 0x24a   : > { %v972_v55 = vpop.f32.mrb[16].mxu0 }
 0x24b   : > { %v978_v56 = vmul.f32 0.35355338, %v972_v55  ;;  %v1365_v57 = vpop.f32.mrb[17].mxu0 }
 0x24c   : > { %v975_v58 = vpop.f32.mrb[18].mxu0 }
 0x24d   : > { %v1366_v59 = vpop.f32.mrb[19].mxu0  ;;  %v979_v60 = vsel %vm589_vm3, -1e+09, %v978_v56 }
 0x24e   : > { %v980_v61 = vsel %vm592_vm2, %v979_v60, -inf }
 0x24f   : > { %981 = vmax.xlane.f32.xlu0 %v980_v61 }
 0x25a   : > { %v643_v62 = vpop.xlane.xlu0 %642 }
 0x25b   : > { %v644_v63 = vsub.f32 %v640_v39, %v643_v62 }
 0x25d   : > { %v645_v0 = vmul.f32 1.442695, %v644_v63 }
 0x25f   : > { %1423 = vpow2.f32 %v645_v0 }
 0x269   : > { %v1424_v2 = vpop.eup %1423 }
 0x26a   : > { %v647_v3 = vsel %vm592_vm2, %v1424_v2, 0.0 }
 0x26b   : > { %648 = vadd.xlane.f32.xlu1 %v647_v3 }
 0x27c   : > { %654 = vrot.lane.b32.xlu1 %v1606_v18, %s1470_s17 }
 0x2cc   : > { %v758_v4 = vpop.xlane.xlu1 %757 }
 0x2cd   : > { %v759_v5 = vsub.f32 %v755_v46, %v758_v4 }
 0x2cf   : > { %v760_v6 = vmul.f32 1.442695, %v759_v5  ;;  %v1276_v5 = vld [vmem:[%s1712_s8] ss:$0 sm:$0xff] }
 0x2d1   : > { %1425 = vpow2.f32 %v760_v6 }
 0x2d4   : > { %v870_v8 = vpop.xlane.xlu0 %869 }
 0x2d5   : > { %v871_v9 = vsub.f32 %v867_v53, %v870_v8  ;;  %v1422_v53 = vld [vmem:[%s1711_s7 + $0x8] sm:$0xff]  }
 0x2d6   : > { %1376 = vmatpush3.bf16.msra.mxu0 %v1422_v53 }
 0x2d7   : > { %v872_v10 = vmul.f32 1.442695, %v871_v9 }
 0x2d9   : > { %1427 = vpow2.f32 %v872_v10 }
 0x2db   : > { %v1426_v11 = vpop.eup %1425 }
 0x2dc   : > { %v982_v12 = vpop.xlane.xlu0 %981  ;;  %v762_v13 = vsel %vm592_vm2, %v1426_v11, 0.0 }
 0x2dd   : > { %v983_v14 = vsub.f32 %v979_v60, %v982_v12  ;;  %763 = vadd.xlane.f32.xlu0 %v762_v13 }
 0x2df   : > { %v984_v15 = vmul.f32 1.442695, %v983_v14 }
 0x2e1   : > { %1429 = vpow2.f32 %v984_v15 }
 0x2e3   : > { %v1428_v16 = vpop.eup %1427 }
 0x2e4   : > { %v874_v17 = vsel %vm592_vm2, %v1428_v16, 0.0 }
 0x2e5   : > { %875 = vadd.xlane.f32.xlu1 %v874_v17 }
 0x2eb   : > { %v1430_v19 = vpop.eup %1429 }
 0x2ec   : > { %v986_v20 = vsel %vm592_vm2, %v1430_v19, 0.0 }
 0x2ed   : > { %987 = vadd.xlane.f32.xlu0 %v986_v20 }
 0x2f6   : > { %880 = vrot.lane.b32.xlu1 %v1606_v18, %s1471_s13 }
 0x2f8   : > { %v649_v21 = vpop.xlane.xlu1 %648 }
 0x2f9   : > { %1431 = vrcp.f32 %v649_v21 }
 0x2fa   : > { %992 = vrot.lane.b32.xlu1 %v1606_v18, %s1472_s14 }
 0x2fc   : > { %v655_v22 = vpop.permute.xlu1 %654 }
 0x2fd   : > { %v661_v23 = vsel %vm659_vm4, %v655_v22, 0 }
 0x2fe   : > { %1332 = vmatpush3.bf16.msra.mxu1 %v661_v23 }
 0x2ff   : > { %1343 = vmatprep.subr.bf16.mxu1 %v1465_v1 }
 0x303   : > { %v1432_v24 = vpop.eup %1431  ;;  %768 = vrot.lane.b32.xlu0 %v1606_v18, %s1473_s15 }
 0x304   : > { %v651_v25 = vmul.f32 %v1432_v24, %v1424_v2 }
 0x306   : > { %v652_v26 = vpack.c.bf16 %v651_v25, %v651_v25  ;;  %v1281_v25 = vld [vmem:[%s1714_s10] ss:$0 sm:$0xff] }
 0x308   : > { %1334 = vmatmul.mubr.msk.bf16.vlgmr.msra.gmra.mrb[4].mxu1 %vm592_vm2, %v652_v26 }
 0x309   : > { %1345 = vmatprep.mubr.msk.bf16.mxu1 %vm1466_vm0, %v1465_v1 }
 0x36a   : > { %v764_v27 = vpop.xlane.xlu0 %763 }
 0x36b   : > { %1433 = vrcp.f32 %v764_v27 }
 0x372   : > { %v876_v28 = vpop.xlane.xlu1 %875 }
 0x373   : > { %1435 = vrcp.f32 %v876_v28 }
 0x375   : > { %v1434_v29 = vpop.eup %1433 }
 0x376   : > { %v766_v31 = vmul.f32 %v1434_v29, %v1426_v11  ;;  %v881_v34 = vpop.permute.xlu1 %880 }
 0x377   : > { %v886_v36 = vsel %vm659_vm4, %v881_v34, 0 }
 0x378   : > { %v767_v18 = vpack.c.bf16 %v766_v31, %v766_v31 }
 0x37a   : > { %v988_v30 = vpop.xlane.xlu0 %987  ;;  %v993_v38 = vpop.permute.xlu1 %992 }
 0x37b   : > { %1437 = vrcp.f32 %v988_v30  ;;  %v998_v41 = vsel %vm659_vm4, %v993_v38, 0 }
 0x37d   : > { %v1436_v35 = vpop.eup %1435 }
 0x37e   : > { %v769_v32 = vpop.permute.xlu0 %768  ;;  %v878_v37 = vmul.f32 %v1436_v35, %v1428_v16 }
 0x37f   : > { %v774_v33 = vsel %vm659_vm4, %v769_v32, 0 }
 0x380   : > { %1344 = vmatpush3.bf16.msra.mxu1 %v774_v33  ;;  %v879_v39 = vpack.c.bf16 %v878_v37, %v878_v37 }
 0x381   : > { %1355 = vmatprep.subr.bf16.mxu1 %v1465_v1 }
 0x383   : > { %1346 = vmatmul.mubr.msk.bf16.vlgmr.msra.gmra.mrb[8].mxu1 %vm592_vm2, %v767_v18 }
 0x384   : > { %1356 = vmatpush3.bf16.msra.mxu1 %v886_v36  ;;  %1357 = vmatprep.mubr.msk.bf16.mxu1 %vm1466_vm0, %v1465_v1 }
 0x385   : > { %1367 = vmatprep.subr.bf16.mxu1 %v1465_v1  ;;  %v1438_v40 = vpop.eup %1437 }
 0x386   : > { %v990_v42 = vmul.f32 %v1438_v40, %v1430_v19 }
 0x388   : > { %v991_v43 = vpack.c.bf16 %v990_v42, %v990_v42 }
 0x38b   : > { %1358 = vmatmul.mubr.msk.bf16.vlgmr.msra.gmra.mrb[12].mxu1 %vm592_vm2, %v879_v39 }
 0x38c   : > { %1368 = vmatpush3.bf16.msra.mxu1 %v998_v41  ;;  %1369 = vmatprep.mubr.msk.bf16.mxu1 %vm1466_vm0, %v1465_v1 }
 0x393   : > { %1370 = vmatmul.mubr.msk.bf16.vlgmr.msra.gmra.mrb[16].mxu1 %vm592_vm2, %v991_v43 }
 0x3db   : > { %v697_v44 = vpop.f32.mrb[4].mxu1 }
 0x3dc   : > { %v1335_v45 = vpop.f32.mrb[5].mxu1 }
 0x3dd   : > { %v700_v46 = vpop.f32.mrb[6].mxu1 }
 0x3de   : > { %v1336_v47 = vpop.f32.mrb[7].mxu1 }
 0x456   : > { %v810_v49 = vpop.f32.mrb[8].mxu1 }
 0x457   : > { %1041 = vrot.lane.b32.xlu0 %v810_v49, %s1474_s22  ;;  %v1347_v50 = vpop.f32.mrb[9].mxu1 }
 0x458   : > { %v813_v51 = vpop.f32.mrb[10].mxu1 }
 0x459   : > { %v1348_v52 = vpop.f32.mrb[11].mxu1 }
 0x45e   : > { %v922_v54 = vpop.f32.mrb[12].mxu1 }
 0x45f   : > { %1045 = vrot.lane.b32.xlu1 %v922_v54, %s1475_s25  ;;  %v1359_v55 = vpop.f32.mrb[13].mxu1 }
 0x460   : > { %v925_v56 = vpop.f32.mrb[14].mxu1 }
 0x461   : > { %v1360_v57 = vpop.f32.mrb[15].mxu1 }
 0x466   : > { %v1034_v58 = vpop.f32.mrb[16].mxu1 }
 0x467   : > { %1049 = vrot.lane.b32.xlu0 %v1034_v58, %s1476_s26  ;;  %v1371_v1 = vpop.f32.mrb[17].mxu1 }
 0x468   : > { %v1037_v59 = vpop.f32.mrb[18].mxu1 }
 0x469   : > { %v1372_v60 = vpop.f32.mrb[19].mxu1 }
 0x4c9   : > { %v1042_v61 = vpop.permute.xlu0 %1041 }
 0x4ca   : > { %v1052_v63 = vsel %vm592_vm2, %v697_v44, %v1042_v61 }
 0x4d1   : > { %v1046_v62 = vpop.permute.xlu1 %1045 }
 0x4d2   : > { %v1054_v0 = vsel %vm1053_vm5, %v1052_v63, %v1046_v62 }
 0x4d9   : > { %v1050_v2 = vpop.permute.xlu0 %1049 }
 0x4da   : > { %v1056_v3 = vsel %vm1055_vm6, %v1054_v0, %v1050_v2 }
 0x4db   : > { %v1057_v4 = vpack.c.bf16 %v1056_v3, %v1056_v3 }
 0x4dd   : > { %1378 = vmatmul.mubr.msk.bf16.vlgmr.msra.gmra.mrb[20].mxu0 %vm472_vm1, %v1057_v4 }
 0x5b0   : > { %v1118_v6 = vpop.f32.mrb[20].mxu0 }
 0x5b1   : > { %v1119_v8 = vadd.f32 %v1276_v5, %v1118_v6  ;;  %v1379_v9 = vpop.f32.mrb[21].mxu0 }
 0x5b2   : > { %v1121_v10 = vpop.f32.mrb[22].mxu0 }
 0x5b3   : > { %v1380_v11 = vpop.f32.mrb[23].mxu0  ;;  %v1124_v12 = vadd.f32 %v1119_v8, %v1590_v7  ;;  %v1280_v7 = vld [vmem:[%s1713_s9] ss:$0 sm:$0xff] }
 0x5b5   : > { %v1125_v13 = vsel %vm472_vm1, %v1124_v12, 0.0 }
 0x5b6   : > { %1126 = vadd.xlane.f32.xlu1 %v1125_v13 }
 0x643   : > { %v1127_v14 = vpop.xlane.xlu1 %1126 }
 0x644   : > { %v1129_v15 = vmul.f32 0.03125, %v1127_v14 }
 0x646   : > { %v1130_v16 = vsub.f32 %v1124_v12, %v1129_v15 }
 0x648   : > { %v1131_v17 = vmul.f32 %v1130_v16, %v1130_v16 }
 0x64a   : > { %v1132_v19 = vsel %vm472_vm1, %v1131_v17, 0.0 }
 0x64b   : > { %1133 = vadd.xlane.f32.xlu0 %v1132_v19 }
 0x6d8   : > { %v1134_v20 = vpop.xlane.xlu0 %1133 }
 0x6d9   : > { %v1135_v21 = vmul.f32 0.03125, %v1134_v20 }
 0x6db   : > { %v1136_v22 = vadd.f32 1e-05, %v1135_v21 }
 0x6dd   : > { %1439 = vrsqrt.f32 %v1136_v22 }
 0x6e7   : > { %v1440_v23 = vpop.eup %1439 }
 0x6e8   : > { %v1138_v24 = vmul.f32 %v1440_v23, %v1130_v16 }
 0x6ea   : > { %v1146_v26 = vmul.f32 %v1280_v7, %v1138_v24 }
 0x6ec   : > { %v1154_v27 = vadd.f32 %v1281_v25, %v1146_v26 }
 0x6ee   : > { %1155 = vst.msk [vmem:[%s443_s16] sm:$0xff] %vm472_vm1, %v1154_v27 }
 0x6ef PF: > { %s21_s19 = sadd.s32 1, %s1463_s19   ;;  %s1716_s17 = smov %s1459_s18 }
 0x6f0   : > { %p18_p5 = scmp.ge.s32.totalorder %s21_s19, 4   ;;  %s1717_s18 = smov %s1719_s20 }
 0x6f2   :  { %20 = sbr.rel (!%p18_p5) target bundleno = 2 (0x2), region = 100 }

</bundles_post_ra>
